<compile_context>
chip_gen: v7x
topology: tpu7x:2x2x1
jax: 0.10.0
libtpu: 0.0.40
codegen_flags: <defaults>
</compile_context>

<pallas_src>
import functools

import jax
import jax.numpy as jnp
from jax.experimental import pallas as pl
from jax.experimental.pallas import tpu as pltpu


def _sincos(t):
    """sin(t), cos(t) via pi/2 quadrant reduction + short polynomials (f32)."""
    two_over_pi = 0.6366197723675814
    half_pi = 1.5707963267948966
    k = jnp.floor(t * two_over_pi + 0.5)
    r = t - k * half_pi
    r2 = r * r
    sin_r = r * (1.0 + r2 * (-1.0 / 6.0 + r2 * (1.0 / 120.0 + r2 * (-1.0 / 5040.0))))
    cos_r = 1.0 + r2 * (-0.5 + r2 * (1.0 / 24.0
                  + r2 * (-1.0 / 720.0 + r2 * (1.0 / 40320.0))))
    q = k.astype(jnp.int32) & 3            # quadrant mod 4 (two's complement)
    sin_t = jnp.where(q == 0, sin_r,
            jnp.where(q == 1, cos_r,
            jnp.where(q == 2, -sin_r, -cos_r)))
    cos_t = jnp.where(q == 0, cos_r,
            jnp.where(q == 1, -sin_r,
            jnp.where(q == 2, -cos_r, sin_r)))
    return sin_t, cos_t


def _digitcaps_kernel(xbd_r_ref, xbd_i_ref, w_r_ref, w_i_ref, out_ref, *,
                      out_caps, out_dim, num_routing):
    f32 = jnp.float32
    O, D = out_caps, out_dim
    M = O * D

    def dotf(a, b):
        return jnp.dot(a, b, preferred_element_type=f32)

    # ---- u_hat = W @ x (complex): 3 dense (I, I*K)x(I*K, M) MXU matmuls (Karatsuba).
    xbd_r = xbd_r_ref[...]                 # (I, I*K) row-block-diagonal input slab
    xbd_i = xbd_i_ref[...]
    w_r = w_r_ref[...]                     # (I*K, M) dense weight slab
    w_i = w_i_ref[...]
    t1 = dotf(xbd_r, w_r)
    t2 = dotf(xbd_i, w_i)
    t3 = dotf(xbd_r + xbd_i, w_r + w_i)
    u_r = t1 - t2                          # (I, M), lane index m = o*out_dim + d
    u_i = t3 - t1 - t2

    # ---- 0/1 segment matrices over the out_dim groups of the lane axis ----
    m_idx = jax.lax.broadcasted_iota(jnp.int32, (M, O), 0)
    o_idx = jax.lax.broadcasted_iota(jnp.int32, (M, O), 1)
    E = jnp.where(jnp.logical_and(m_idx >= o_idx * D, m_idx < o_idx * D + D),
                  1.0, 0.0).astype(f32)                         # (M, O)
    o_idx2 = jax.lax.broadcasted_iota(jnp.int32, (O, M), 0)
    m_idx2 = jax.lax.broadcasted_iota(jnp.int32, (O, M), 1)
    ET = jnp.where(jnp.logical_and(m_idx2 >= o_idx2 * D, m_idx2 < o_idx2 * D + D),
                   1.0, 0.0).astype(f32)                        # (O, M)

    def softmax_over_o(logits):            # (I, O) softmax along out_caps
        z = logits - jnp.max(logits, axis=-1, keepdims=True)
        e = jnp.exp(z)
        return e * pl.reciprocal(jnp.sum(e, axis=-1, keepdims=True), approx=True)

    def seg_bcast_sum(y):                  # (1, M): per-out-capsule sum, broadcast back
        return dotf(dotf(y, E), ET)

    def squash_complex(s_r, s_i):
        # squared_norm = sum_d s*s (complex square, no conjugate — as in reference)
        sq_r = seg_bcast_sum(s_r * s_r - s_i * s_i)
        sq_i = seg_bcast_sum(2.0 * s_r * s_i)
        # rt = sqrt(squared_norm), principal branch, real arithmetic
        mag = jnp.sqrt(sq_r * sq_r + sq_i * sq_i)
        rt_r = jnp.sqrt(jnp.maximum(mag + sq_r, 0.0) * 0.5)
        rt_i = jnp.where(sq_i < 0.0, -1.0, 1.0) * jnp.sqrt(
            jnp.maximum(mag - sq_r, 0.0) * 0.5)
        # tanh(rt) = (sinh 2x + i sin 2y) / (cosh 2x + cos 2y)
        x2 = jnp.minimum(2.0 * rt_r, 30.0)          # rt_r >= 0; avoid exp overflow
        e_p = jnp.exp(x2)
        e_m = jnp.exp(-x2)
        sinh2 = 0.5 * (e_p - e_m)
        cosh2 = 0.5 * (e_p + e_m)
        sin2, cos2 = _sincos(2.0 * rt_i)
        inv_den = pl.reciprocal(cosh2 + cos2, approx=True)
        t_r = sinh2 * inv_den
        t_i = sin2 * inv_den
        # v = tanh(rt) * s / (rt + 1e-8)   (1e-8 added to the real part, as in torch)
        wr = rt_r + 1e-8
        wi = rt_i
        ts_r = t_r * s_r - t_i * s_i
        ts_i = t_r * s_i + t_i * s_r
        inv_w = pl.reciprocal(wr * wr + wi * wi, approx=True)
        v_r = (ts_r * wr + ts_i * wi) * inv_w
        v_i = (ts_i * wr - ts_r * wi) * inv_w
        return v_r, v_i

    # ---- routing iteration 0: b == 0 -> uniform coupling 1/out_caps ----
    s_r = jnp.sum(u_r, axis=0, keepdims=True) * (1.0 / O)       # (1, M)
    s_i = jnp.sum(u_i, axis=0, keepdims=True) * (1.0 / O)
    v_r, v_i = squash_complex(s_r, s_i)

    # ---- middle iterations: c = softmax(Re(u_hat . v)) over out_caps ----
    for _ in range(num_routing - 2):
        uv_r = dotf(u_r * v_r - u_i * v_i, E)                   # (I, O)
        c = softmax_over_o(uv_r)
        c_exp = dotf(c, ET)                                     # (I, M)
        s_r = jnp.sum(c_exp * u_r, axis=0, keepdims=True)
        s_i = jnp.sum(c_exp * u_i, axis=0, keepdims=True)
        v_r, v_i = squash_complex(s_r, s_i)

    # ---- final: |u_hat . v|^2 softmax, real weighted sum, real squash ----
    uv_r = dotf(u_r * v_r - u_i * v_i, E)
    uv_i = dotf(u_r * v_i + u_i * v_r, E)
    c = softmax_over_o(uv_r * uv_r + uv_i * uv_i)
    c_exp = dotf(c, ET)
    s = jnp.sum(c_exp * u_r, axis=0, keepdims=True)             # (1, M)
    rt = jnp.sqrt(seg_bcast_sum(s * s))
    out_ref[...] = jnp.tanh(rt) * s * pl.reciprocal(rt + 1e-8, approx=True)


@functools.partial(jax.jit, static_argnames=("num_routing",))
def digitcaps_forward(x, W, num_routing):
    """x: (B, in_caps, in_dim) complex64; W: (1, out_caps, in_caps, out_dim, in_dim)."""
    assert num_routing >= 2
    Wq = jnp.squeeze(W, axis=0)                    # (O, I, D, K)
    O, I, D, K = Wq.shape
    B = x.shape[0]
    M = O * D
    f32 = jnp.float32

    # --- wrapper-side layout plumbing (all tiny, one-shot XLA ops) ---
    # Dense weight slab: w_flat[i*K + k, o*D + d] = W[o, i, d, k]
    w_flat = jnp.transpose(Wq, (1, 3, 0, 2)).reshape(I * K, M)
    w_r = jnp.real(w_flat).astype(f32)
    w_i = jnp.imag(w_flat).astype(f32)
    # Row-block-diagonal input: x_bd[b, i, i*K + k] = x[b, i, k]; turns the per-in-capsule
    # transform into ONE dense (I, I*K)x(I*K, M) MXU matmul per Karatsuba product,
    # emitting u_hat directly in the lane-dense layout the routing consumes.
    eye = jnp.eye(I, dtype=f32)
    x_r = jnp.real(x).astype(f32)
    x_i = jnp.imag(x).astype(f32)
    xbd_r = (x_r[:, :, None, :] * eye[None, :, :, None]).reshape(B, I, I * K)
    xbd_i = (x_i[:, :, None, :] * eye[None, :, :, None]).reshape(B, I, I * K)

    kernel = functools.partial(_digitcaps_kernel, out_caps=O, out_dim=D,
                               num_routing=num_routing)
    out = pl.pallas_call(
        kernel,
        out_shape=jax.ShapeDtypeStruct((B, 1, M), f32),
        grid=(B,),
        in_specs=[
            pl.BlockSpec((None, I, I * K), lambda b: (b, 0, 0)),
            pl.BlockSpec((None, I, I * K), lambda b: (b, 0, 0)),
            pl.BlockSpec((I * K, M), lambda b: (0, 0)),
            pl.BlockSpec((I * K, M), lambda b: (0, 0)),
        ],
        out_specs=pl.BlockSpec((None, 1, M), lambda b: (b, 0, 0)),
        compiler_params=pltpu.CompilerParams(
            dimension_semantics=("parallel",)),
    )(xbd_r, xbd_i, w_r, w_i)
    return out.reshape(B, O, D)


# --------------------------------------------------------------------------- #
# Pure-JAX reference mirroring the PyTorch forward (complex64 / float32).
# --------------------------------------------------------------------------- #
def _ref_squash(s):
    sq = jnp.sum(s * s, axis=-1, keepdims=True)
    rt = jnp.sqrt(sq)
    return jnp.tanh(rt) * s / (rt + 1e-8)


def _reference(x, W, num_routing):
    xq = x[:, None, :, :, None]                     # (B,1,I,K,1)
    u_hat = jnp.squeeze(jnp.matmul(W, xq), -1)      # (B,O,I,D) complex64
    B, O, I, D = u_hat.shape
    b = jnp.zeros((B, O, I, 1), jnp.float32)
    uv = None
    for _ in range(num_routing - 1):
        c = jax.nn.softmax(b, axis=1)
        s = jnp.sum(c * u_hat, axis=2)              # (B,O,D) complex
        v = _ref_squash(s)
        uv = jnp.matmul(u_hat, v[:, :, :, None])    # (B,O,I,1) complex
        b = jnp.real(uv)                            # torch .type(float) keeps real part
    b_fin = jnp.real(uv) ** 2 + jnp.imag(uv) ** 2
    c = jax.nn.softmax(b_fin, axis=1)
    s = jnp.sum(c * jnp.real(u_hat), axis=2)        # u_hat.type(float) keeps real part
    return _ref_squash(s)


if __name__ == "__main__":
    key = jax.random.PRNGKey(0)
    kx_r, kx_i, kw_r, kw_i = jax.random.split(key, 4)

    B, IN_CAPS, IN_DIM, OUT_CAPS, OUT_DIM, NUM_ROUTING = 2, 32, 8, 4, 16, 3

    x = jax.lax.complex(
        jax.random.normal(kx_r, (B, IN_CAPS, IN_DIM), jnp.float32),
        jax.random.normal(kx_i, (B, IN_CAPS, IN_DIM), jnp.float32))
    W = jax.lax.complex(
        0.05 * jax.random.normal(kw_r, (1, OUT_CAPS, IN_CAPS, OUT_DIM, IN_DIM), jnp.float32),
        0.05 * jax.random.normal(kw_i, (1, OUT_CAPS, IN_CAPS, OUT_DIM, IN_DIM), jnp.float32))

    v = digitcaps_forward(x, W, NUM_ROUTING)
    jax.block_until_ready(v)

    v_ref = _reference(x, W, NUM_ROUTING)
    assert v.shape == (B, OUT_CAPS, OUT_DIM), v.shape
    assert jnp.allclose(v, v_ref, atol=2e-3, rtol=2e-2), (
        "max abs diff", float(jnp.max(jnp.abs(v - v_ref))))

    print("KERNEL_OK")
</pallas_src>

<mosaic_0001>
module attributes {stable_mosaic.version = 11 : i64} {
  func.func @_digitcaps_kernel(%arg0: i32, %arg1: memref<1x32x256xf32, #tpu.memory_space<vmem>>, %arg2: memref<1x32x256xf32, #tpu.memory_space<vmem>>, %arg3: memref<256x64xf32, #tpu.memory_space<vmem>>, %arg4: memref<256x64xf32, #tpu.memory_space<vmem>>, %arg5: memref<1x1x64xf32, #tpu.memory_space<vmem>>) attributes {dimension_semantics = [#tpu.dimension_semantics<parallel>], iteration_bounds = array<i64: 2>, scalar_prefetch = 0 : i64, scratch_operands = 0 : i64, tpu.core_type = #tpu.core_type<tc>, window_params = [{transform_indices = @transform_0, window_bounds = array<i64: 1, 32, 256>}, {transform_indices = @transform_1, window_bounds = array<i64: 1, 32, 256>}, {pipeline_mode = #tpu.pipeline_mode<synchronous>, transform_indices = @transform_2, window_bounds = array<i64: 256, 64>}, {pipeline_mode = #tpu.pipeline_mode<synchronous>, transform_indices = @transform_3, window_bounds = array<i64: 256, 64>}, {transform_indices = @transform_4, window_bounds = array<i64: 1, 1, 64>}]} {
    %c0 = arith.constant 0 : index
    %c0_0 = arith.constant 0 : index
    %c0_1 = arith.constant 0 : index
    %0 = vector.load %arg1[%c0, %c0_0, %c0_1] : memref<1x32x256xf32, #tpu.memory_space<vmem>>, vector<1x32x256xf32>
    %1 = vector.shape_cast %0 : vector<1x32x256xf32> to vector<32x256xf32>
    %c0_2 = arith.constant 0 : index
    %c0_3 = arith.constant 0 : index
    %c0_4 = arith.constant 0 : index
    %2 = vector.load %arg2[%c0_2, %c0_3, %c0_4] : memref<1x32x256xf32, #tpu.memory_space<vmem>>, vector<1x32x256xf32>
    %3 = vector.shape_cast %2 : vector<1x32x256xf32> to vector<32x256xf32>
    %c0_5 = arith.constant 0 : index
    %c0_6 = arith.constant 0 : index
    %4 = vector.load %arg3[%c0_5, %c0_6] : memref<256x64xf32, #tpu.memory_space<vmem>>, vector<256x64xf32>
    %c0_7 = arith.constant 0 : index
    %c0_8 = arith.constant 0 : index
    %5 = vector.load %arg4[%c0_7, %c0_8] : memref<256x64xf32, #tpu.memory_space<vmem>>, vector<256x64xf32>
    %cst = arith.constant dense<0.000000e+00> : vector<32x64xf32>
    %6 = tpu.matmul %1, %4, %cst {dimension_numbers = #tpu.dot_dimension_numbers<[1], [0], [0], [1], [0, 0, 1, 1], [], []>} : vector<32x256xf32>, vector<256x64xf32>, vector<32x64xf32> -> vector<32x64xf32>
    %cst_9 = arith.constant dense<0.000000e+00> : vector<32x64xf32>
    %7 = tpu.matmul %3, %5, %cst_9 {dimension_numbers = #tpu.dot_dimension_numbers<[1], [0], [0], [1], [0, 0, 1, 1], [], []>} : vector<32x256xf32>, vector<256x64xf32>, vector<32x64xf32> -> vector<32x64xf32>
    %8 = arith.addf %1, %3 : vector<32x256xf32>
    %9 = arith.addf %4, %5 : vector<256x64xf32>
    %cst_10 = arith.constant dense<0.000000e+00> : vector<32x64xf32>
    %10 = tpu.matmul %8, %9, %cst_10 {dimension_numbers = #tpu.dot_dimension_numbers<[1], [0], [0], [1], [0, 0, 1, 1], [], []>} : vector<32x256xf32>, vector<256x64xf32>, vector<32x64xf32> -> vector<32x64xf32>
    %11 = arith.subf %6, %7 : vector<32x64xf32>
    %12 = arith.subf %10, %6 : vector<32x64xf32>
    %13 = arith.subf %12, %7 : vector<32x64xf32>
    %14 = tpu.iota {dimensions = array<i32: 0>} : vector<64x4xi32>
    %15 = tpu.iota {dimensions = array<i32: 1>} : vector<64x4xi32>
    %c16_i32 = arith.constant 16 : i32
    %16 = vector.broadcast %c16_i32 : i32 to vector<64x4xi32>
    %17 = arith.muli %15, %16 : vector<64x4xi32>
    %18 = arith.cmpi sge, %14, %17 : vector<64x4xi32>
    %c16_i32_11 = arith.constant 16 : i32
    %19 = vector.broadcast %c16_i32_11 : i32 to vector<64x4xi32>
    %20 = arith.muli %15, %19 : vector<64x4xi32>
    %c16_i32_12 = arith.constant 16 : i32
    %21 = vector.broadcast %c16_i32_12 : i32 to vector<64x4xi32>
    %22 = arith.addi %20, %21 : vector<64x4xi32>
    %23 = arith.cmpi slt, %14, %22 : vector<64x4xi32>
    %24 = arith.andi %18, %23 : vector<64x4xi1>
    %cst_13 = arith.constant 1.000000e+00 : f32
    %cst_14 = arith.constant 0.000000e+00 : f32
    %25 = vector.broadcast %cst_13 : f32 to vector<64x4xf32>
    %26 = vector.broadcast %cst_14 : f32 to vector<64x4xf32>
    %27 = arith.select %24, %25, %26 : vector<64x4xi1>, vector<64x4xf32>
    %28 = tpu.iota {dimensions = array<i32: 0>} : vector<4x64xi32>
    %29 = tpu.iota {dimensions = array<i32: 1>} : vector<4x64xi32>
    %c16_i32_15 = arith.constant 16 : i32
    %30 = vector.broadcast %c16_i32_15 : i32 to vector<4x64xi32>
    %31 = arith.muli %28, %30 : vector<4x64xi32>
    %32 = arith.cmpi sge, %29, %31 : vector<4x64xi32>
    %c16_i32_16 = arith.constant 16 : i32
    %33 = vector.broadcast %c16_i32_16 : i32 to vector<4x64xi32>
    %34 = arith.muli %28, %33 : vector<4x64xi32>
    %c16_i32_17 = arith.constant 16 : i32
    %35 = vector.broadcast %c16_i32_17 : i32 to vector<4x64xi32>
    %36 = arith.addi %34, %35 : vector<4x64xi32>
    %37 = arith.cmpi slt, %29, %36 : vector<4x64xi32>
    %38 = arith.andi %32, %37 : vector<4x64xi1>
    %cst_18 = arith.constant 1.000000e+00 : f32
    %cst_19 = arith.constant 0.000000e+00 : f32
    %39 = vector.broadcast %cst_18 : f32 to vector<4x64xf32>
    %40 = vector.broadcast %cst_19 : f32 to vector<4x64xf32>
    %41 = arith.select %38, %39, %40 : vector<4x64xi1>, vector<4x64xf32>
    %cst_20 = arith.constant dense<0.000000e+00> : vector<64xf32>
    %42 = vector.multi_reduction <add>, %11, %cst_20 [0] : vector<32x64xf32> to vector<64xf32>
    %43 = vector.shape_cast %42 : vector<64xf32> to vector<1x64xf32>
    %cst_21 = arith.constant 2.500000e-01 : f32
    %44 = vector.broadcast %cst_21 : f32 to vector<1x64xf32>
    %45 = arith.mulf %43, %44 : vector<1x64xf32>
    %cst_22 = arith.constant dense<0.000000e+00> : vector<64xf32>
    %46 = vector.multi_reduction <add>, %13, %cst_22 [0] : vector<32x64xf32> to vector<64xf32>
    %47 = vector.shape_cast %46 : vector<64xf32> to vector<1x64xf32>
    %cst_23 = arith.constant 2.500000e-01 : f32
    %48 = vector.broadcast %cst_23 : f32 to vector<1x64xf32>
    %49 = arith.mulf %47, %48 : vector<1x64xf32>
    %50 = arith.mulf %45, %45 : vector<1x64xf32>
    %51 = arith.mulf %49, %49 : vector<1x64xf32>
    %52 = arith.subf %50, %51 : vector<1x64xf32>
    %cst_24 = arith.constant dense<0.000000e+00> : vector<1x4xf32>
    %53 = tpu.matmul %52, %27, %cst_24 {dimension_numbers = #tpu.dot_dimension_numbers<[1], [0], [0], [1], [0, 0, 1, 1], [], []>} : vector<1x64xf32>, vector<64x4xf32>, vector<1x4xf32> -> vector<1x4xf32>
    %cst_25 = arith.constant dense<0.000000e+00> : vector<1x64xf32>
    %54 = tpu.matmul %53, %41, %cst_25 {dimension_numbers = #tpu.dot_dimension_numbers<[1], [0], [0], [1], [0, 0, 1, 1], [], []>} : vector<1x4xf32>, vector<4x64xf32>, vector<1x64xf32> -> vector<1x64xf32>
    %cst_26 = arith.constant 2.000000e+00 : f32
    %55 = vector.broadcast %cst_26 : f32 to vector<1x64xf32>
    %56 = arith.mulf %55, %45 : vector<1x64xf32>
    %57 = arith.mulf %56, %49 : vector<1x64xf32>
    %cst_27 = arith.constant dense<0.000000e+00> : vector<1x4xf32>
    %58 = tpu.matmul %57, %27, %cst_27 {dimension_numbers = #tpu.dot_dimension_numbers<[1], [0], [0], [1], [0, 0, 1, 1], [], []>} : vector<1x64xf32>, vector<64x4xf32>, vector<1x4xf32> -> vector<1x4xf32>
    %cst_28 = arith.constant dense<0.000000e+00> : vector<1x64xf32>
    %59 = tpu.matmul %58, %41, %cst_28 {dimension_numbers = #tpu.dot_dimension_numbers<[1], [0], [0], [1], [0, 0, 1, 1], [], []>} : vector<1x4xf32>, vector<4x64xf32>, vector<1x64xf32> -> vector<1x64xf32>
    %60 = arith.mulf %54, %54 : vector<1x64xf32>
    %61 = arith.mulf %59, %59 : vector<1x64xf32>
    %62 = arith.addf %60, %61 : vector<1x64xf32>
    %63 = math.sqrt %62 : vector<1x64xf32>
    %64 = arith.addf %63, %54 : vector<1x64xf32>
    %cst_29 = arith.constant 0.000000e+00 : f32
    %65 = vector.broadcast %cst_29 : f32 to vector<1x64xf32>
    %66 = arith.maximumf %64, %65 : vector<1x64xf32>
    %cst_30 = arith.constant 5.000000e-01 : f32
    %67 = vector.broadcast %cst_30 : f32 to vector<1x64xf32>
    %68 = arith.mulf %66, %67 : vector<1x64xf32>
    %69 = math.sqrt %68 : vector<1x64xf32>
    %cst_31 = arith.constant 0.000000e+00 : f32
    %70 = vector.broadcast %cst_31 : f32 to vector<1x64xf32>
    %71 = arith.cmpf olt, %59, %70 : vector<1x64xf32>
    %cst_32 = arith.constant -1.000000e+00 : f32
    %cst_33 = arith.constant 1.000000e+00 : f32
    %72 = vector.broadcast %cst_32 : f32 to vector<1x64xf32>
    %73 = vector.broadcast %cst_33 : f32 to vector<1x64xf32>
    %74 = arith.select %71, %72, %73 : vector<1x64xi1>, vector<1x64xf32>
    %75 = arith.subf %63, %54 : vector<1x64xf32>
    %cst_34 = arith.constant 0.000000e+00 : f32
    %76 = vector.broadcast %cst_34 : f32 to vector<1x64xf32>
    %77 = arith.maximumf %75, %76 : vector<1x64xf32>
    %cst_35 = arith.constant 5.000000e-01 : f32
    %78 = vector.broadcast %cst_35 : f32 to vector<1x64xf32>
    %79 = arith.mulf %77, %78 : vector<1x64xf32>
    %80 = math.sqrt %79 : vector<1x64xf32>
    %81 = arith.mulf %74, %80 : vector<1x64xf32>
    %cst_36 = arith.constant 2.000000e+00 : f32
    %82 = vector.broadcast %cst_36 : f32 to vector<1x64xf32>
    %83 = arith.mulf %82, %69 : vector<1x64xf32>
    %cst_37 = arith.constant 3.000000e+01 : f32
    %84 = vector.broadcast %cst_37 : f32 to vector<1x64xf32>
    %85 = arith.minimumf %83, %84 : vector<1x64xf32>
    %86 = math.exp %85 : vector<1x64xf32>
    %cst_38 = arith.constant 0.000000e+00 : f32
    %87 = vector.broadcast %cst_38 : f32 to vector<1x64xf32>
    %88 = arith.subf %87, %85 : vector<1x64xf32>
    %89 = math.exp %88 : vector<1x64xf32>
    %90 = arith.subf %86, %89 : vector<1x64xf32>
    %cst_39 = arith.constant 5.000000e-01 : f32
    %91 = vector.broadcast %cst_39 : f32 to vector<1x64xf32>
    %92 = arith.mulf %91, %90 : vector<1x64xf32>
    %93 = arith.addf %86, %89 : vector<1x64xf32>
    %cst_40 = arith.constant 5.000000e-01 : f32
    %94 = vector.broadcast %cst_40 : f32 to vector<1x64xf32>
    %95 = arith.mulf %94, %93 : vector<1x64xf32>
    %cst_41 = arith.constant 2.000000e+00 : f32
    %96 = vector.broadcast %cst_41 : f32 to vector<1x64xf32>
    %97 = arith.mulf %96, %81 : vector<1x64xf32>
    %cst_42 = arith.constant 0.636619746 : f32
    %98 = vector.broadcast %cst_42 : f32 to vector<1x64xf32>
    %99 = arith.mulf %97, %98 : vector<1x64xf32>
    %cst_43 = arith.constant 5.000000e-01 : f32
    %100 = vector.broadcast %cst_43 : f32 to vector<1x64xf32>
    %101 = arith.addf %99, %100 : vector<1x64xf32>
    %102 = math.floor %101 : vector<1x64xf32>
    %cst_44 = arith.constant 1.57079637 : f32
    %103 = vector.broadcast %cst_44 : f32 to vector<1x64xf32>
    %104 = arith.mulf %102, %103 : vector<1x64xf32>
    %105 = arith.subf %97, %104 : vector<1x64xf32>
    %106 = arith.mulf %105, %105 : vector<1x64xf32>
    %cst_45 = arith.constant -1.98412701E-4 : f32
    %107 = vector.broadcast %cst_45 : f32 to vector<1x64xf32>
    %108 = arith.mulf %106, %107 : vector<1x64xf32>
    %cst_46 = arith.constant 0.00833333377 : f32
    %109 = vector.broadcast %cst_46 : f32 to vector<1x64xf32>
    %110 = arith.addf %109, %108 : vector<1x64xf32>
    %111 = arith.mulf %106, %110 : vector<1x64xf32>
    %cst_47 = arith.constant -0.166666672 : f32
    %112 = vector.broadcast %cst_47 : f32 to vector<1x64xf32>
    %113 = arith.addf %112, %111 : vector<1x64xf32>
    %114 = arith.mulf %106, %113 : vector<1x64xf32>
    %cst_48 = arith.constant 1.000000e+00 : f32
    %115 = vector.broadcast %cst_48 : f32 to vector<1x64xf32>
    %116 = arith.addf %115, %114 : vector<1x64xf32>
    %117 = arith.mulf %105, %116 : vector<1x64xf32>
    %cst_49 = arith.constant 2.48015876E-5 : f32
    %118 = vector.broadcast %cst_49 : f32 to vector<1x64xf32>
    %119 = arith.mulf %106, %118 : vector<1x64xf32>
    %cst_50 = arith.constant -0.00138888892 : f32
    %120 = vector.broadcast %cst_50 : f32 to vector<1x64xf32>
    %121 = arith.addf %120, %119 : vector<1x64xf32>
    %122 = arith.mulf %106, %121 : vector<1x64xf32>
    %cst_51 = arith.constant 0.0416666679 : f32
    %123 = vector.broadcast %cst_51 : f32 to vector<1x64xf32>
    %124 = arith.addf %123, %122 : vector<1x64xf32>
    %125 = arith.mulf %106, %124 : vector<1x64xf32>
    %cst_52 = arith.constant -5.000000e-01 : f32
    %126 = vector.broadcast %cst_52 : f32 to vector<1x64xf32>
    %127 = arith.addf %126, %125 : vector<1x64xf32>
    %128 = arith.mulf %106, %127 : vector<1x64xf32>
    %cst_53 = arith.constant 1.000000e+00 : f32
    %129 = vector.broadcast %cst_53 : f32 to vector<1x64xf32>
    %130 = arith.addf %129, %128 : vector<1x64xf32>
    %131 = arith.fptosi %102 : vector<1x64xf32> to vector<1x64xi32>
    %c3_i32 = arith.constant 3 : i32
    %132 = vector.broadcast %c3_i32 : i32 to vector<1x64xi32>
    %133 = arith.andi %131, %132 : vector<1x64xi32>
    %c0_i32 = arith.constant 0 : i32
    %134 = vector.broadcast %c0_i32 : i32 to vector<1x64xi32>
    %135 = arith.cmpi eq, %133, %134 : vector<1x64xi32>
    %c1_i32 = arith.constant 1 : i32
    %136 = vector.broadcast %c1_i32 : i32 to vector<1x64xi32>
    %137 = arith.cmpi eq, %133, %136 : vector<1x64xi32>
    %c2_i32 = arith.constant 2 : i32
    %138 = vector.broadcast %c2_i32 : i32 to vector<1x64xi32>
    %139 = arith.cmpi eq, %133, %138 : vector<1x64xi32>
    %cst_54 = arith.constant 0.000000e+00 : f32
    %140 = vector.broadcast %cst_54 : f32 to vector<1x64xf32>
    %141 = arith.subf %140, %117 : vector<1x64xf32>
    %cst_55 = arith.constant 0.000000e+00 : f32
    %142 = vector.broadcast %cst_55 : f32 to vector<1x64xf32>
    %143 = arith.subf %142, %130 : vector<1x64xf32>
    %144 = arith.select %139, %141, %143 : vector<1x64xi1>, vector<1x64xf32>
    %145 = arith.select %137, %130, %144 : vector<1x64xi1>, vector<1x64xf32>
    %146 = arith.select %135, %117, %145 : vector<1x64xi1>, vector<1x64xf32>
    %c0_i32_56 = arith.constant 0 : i32
    %147 = vector.broadcast %c0_i32_56 : i32 to vector<1x64xi32>
    %148 = arith.cmpi eq, %133, %147 : vector<1x64xi32>
    %c1_i32_57 = arith.constant 1 : i32
    %149 = vector.broadcast %c1_i32_57 : i32 to vector<1x64xi32>
    %150 = arith.cmpi eq, %133, %149 : vector<1x64xi32>
    %cst_58 = arith.constant 0.000000e+00 : f32
    %151 = vector.broadcast %cst_58 : f32 to vector<1x64xf32>
    %152 = arith.subf %151, %117 : vector<1x64xf32>
    %c2_i32_59 = arith.constant 2 : i32
    %153 = vector.broadcast %c2_i32_59 : i32 to vector<1x64xi32>
    %154 = arith.cmpi eq, %133, %153 : vector<1x64xi32>
    %cst_60 = arith.constant 0.000000e+00 : f32
    %155 = vector.broadcast %cst_60 : f32 to vector<1x64xf32>
    %156 = arith.subf %155, %130 : vector<1x64xf32>
    %157 = arith.select %154, %156, %117 : vector<1x64xi1>, vector<1x64xf32>
    %158 = arith.select %150, %152, %157 : vector<1x64xi1>, vector<1x64xf32>
    %159 = arith.select %148, %130, %158 : vector<1x64xi1>, vector<1x64xf32>
    %160 = arith.addf %95, %159 : vector<1x64xf32>
    %161 = tpu.reciprocal %160 {approx = true} : vector<1x64xf32> -> vector<1x64xf32>
    %162 = arith.mulf %92, %161 : vector<1x64xf32>
    %163 = arith.mulf %146, %161 : vector<1x64xf32>
    %cst_61 = arith.constant 9.99999993E-9 : f32
    %164 = vector.broadcast %cst_61 : f32 to vector<1x64xf32>
    %165 = arith.addf %69, %164 : vector<1x64xf32>
    %166 = arith.mulf %162, %45 : vector<1x64xf32>
    %167 = arith.mulf %163, %49 : vector<1x64xf32>
    %168 = arith.subf %166, %167 : vector<1x64xf32>
    %169 = arith.mulf %162, %49 : vector<1x64xf32>
    %170 = arith.mulf %163, %45 : vector<1x64xf32>
    %171 = arith.addf %169, %170 : vector<1x64xf32>
    %172 = arith.mulf %165, %165 : vector<1x64xf32>
    %173 = arith.mulf %81, %81 : vector<1x64xf32>
    %174 = arith.addf %172, %173 : vector<1x64xf32>
    %175 = tpu.reciprocal %174 {approx = true} : vector<1x64xf32> -> vector<1x64xf32>
    %176 = arith.mulf %168, %165 : vector<1x64xf32>
    %177 = arith.mulf %171, %81 : vector<1x64xf32>
    %178 = arith.addf %176, %177 : vector<1x64xf32>
    %179 = arith.mulf %178, %175 : vector<1x64xf32>
    %180 = arith.mulf %171, %165 : vector<1x64xf32>
    %181 = arith.mulf %168, %81 : vector<1x64xf32>
    %182 = arith.subf %180, %181 : vector<1x64xf32>
    %183 = arith.mulf %182, %175 : vector<1x64xf32>
    %184 = vector.broadcast %179 : vector<1x64xf32> to vector<32x64xf32>
    %185 = arith.mulf %11, %184 : vector<32x64xf32>
    %186 = vector.broadcast %183 : vector<1x64xf32> to vector<32x64xf32>
    %187 = arith.mulf %13, %186 : vector<32x64xf32>
    %188 = arith.subf %185, %187 : vector<32x64xf32>
    %cst_62 = arith.constant dense<0.000000e+00> : vector<32x4xf32>
    %189 = tpu.matmul %188, %27, %cst_62 {dimension_numbers = #tpu.dot_dimension_numbers<[1], [0], [0], [1], [0, 0, 1, 1], [], []>} : vector<32x64xf32>, vector<64x4xf32>, vector<32x4xf32> -> vector<32x4xf32>
    %cst_63 = arith.constant dense<0xFF800000> : vector<32xf32>
    %190 = vector.multi_reduction <maximumf>, %189, %cst_63 [1] : vector<32x4xf32> to vector<32xf32>
    %191 = vector.shape_cast %190 : vector<32xf32> to vector<32x1xf32>
    %192 = vector.broadcast %191 : vector<32x1xf32> to vector<32x4xf32>
    %193 = arith.subf %189, %192 : vector<32x4xf32>
    %194 = math.exp %193 : vector<32x4xf32>
    %cst_64 = arith.constant dense<0.000000e+00> : vector<32xf32>
    %195 = vector.multi_reduction <add>, %194, %cst_64 [1] : vector<32x4xf32> to vector<32xf32>
    %196 = vector.shape_cast %195 : vector<32xf32> to vector<32x1xf32>
    %197 = tpu.reciprocal %196 {approx = true} : vector<32x1xf32> -> vector<32x1xf32>
    %198 = vector.broadcast %197 : vector<32x1xf32> to vector<32x4xf32>
    %199 = arith.mulf %194, %198 : vector<32x4xf32>
    %cst_65 = arith.constant dense<0.000000e+00> : vector<32x64xf32>
    %200 = tpu.matmul %199, %41, %cst_65 {dimension_numbers = #tpu.dot_dimension_numbers<[1], [0], [0], [1], [0, 0, 1, 1], [], []>} : vector<32x4xf32>, vector<4x64xf32>, vector<32x64xf32> -> vector<32x64xf32>
    %201 = arith.mulf %200, %11 : vector<32x64xf32>
    %cst_66 = arith.constant dense<0.000000e+00> : vector<64xf32>
    %202 = vector.multi_reduction <add>, %201, %cst_66 [0] : vector<32x64xf32> to vector<64xf32>
    %203 = vector.shape_cast %202 : vector<64xf32> to vector<1x64xf32>
    %204 = arith.mulf %200, %13 : vector<32x64xf32>
    %cst_67 = arith.constant dense<0.000000e+00> : vector<64xf32>
    %205 = vector.multi_reduction <add>, %204, %cst_67 [0] : vector<32x64xf32> to vector<64xf32>
    %206 = vector.shape_cast %205 : vector<64xf32> to vector<1x64xf32>
    %207 = arith.mulf %203, %203 : vector<1x64xf32>
    %208 = arith.mulf %206, %206 : vector<1x64xf32>
    %209 = arith.subf %207, %208 : vector<1x64xf32>
    %cst_68 = arith.constant dense<0.000000e+00> : vector<1x4xf32>
    %210 = tpu.matmul %209, %27, %cst_68 {dimension_numbers = #tpu.dot_dimension_numbers<[1], [0], [0], [1], [0, 0, 1, 1], [], []>} : vector<1x64xf32>, vector<64x4xf32>, vector<1x4xf32> -> vector<1x4xf32>
    %cst_69 = arith.constant dense<0.000000e+00> : vector<1x64xf32>
    %211 = tpu.matmul %210, %41, %cst_69 {dimension_numbers = #tpu.dot_dimension_numbers<[1], [0], [0], [1], [0, 0, 1, 1], [], []>} : vector<1x4xf32>, vector<4x64xf32>, vector<1x64xf32> -> vector<1x64xf32>
    %cst_70 = arith.constant 2.000000e+00 : f32
    %212 = vector.broadcast %cst_70 : f32 to vector<1x64xf32>
    %213 = arith.mulf %212, %203 : vector<1x64xf32>
    %214 = arith.mulf %213, %206 : vector<1x64xf32>
    %cst_71 = arith.constant dense<0.000000e+00> : vector<1x4xf32>
    %215 = tpu.matmul %214, %27, %cst_71 {dimension_numbers = #tpu.dot_dimension_numbers<[1], [0], [0], [1], [0, 0, 1, 1], [], []>} : vector<1x64xf32>, vector<64x4xf32>, vector<1x4xf32> -> vector<1x4xf32>
    %cst_72 = arith.constant dense<0.000000e+00> : vector<1x64xf32>
    %216 = tpu.matmul %215, %41, %cst_72 {dimension_numbers = #tpu.dot_dimension_numbers<[1], [0], [0], [1], [0, 0, 1, 1], [], []>} : vector<1x4xf32>, vector<4x64xf32>, vector<1x64xf32> -> vector<1x64xf32>
    %217 = arith.mulf %211, %211 : vector<1x64xf32>
    %218 = arith.mulf %216, %216 : vector<1x64xf32>
    %219 = arith.addf %217, %218 : vector<1x64xf32>
    %220 = math.sqrt %219 : vector<1x64xf32>
    %221 = arith.addf %220, %211 : vector<1x64xf32>
    %cst_73 = arith.constant 0.000000e+00 : f32
    %222 = vector.broadcast %cst_73 : f32 to vector<1x64xf32>
    %223 = arith.maximumf %221, %222 : vector<1x64xf32>
    %cst_74 = arith.constant 5.000000e-01 : f32
    %224 = vector.broadcast %cst_74 : f32 to vector<1x64xf32>
    %225 = arith.mulf %223, %224 : vector<1x64xf32>
    %226 = math.sqrt %225 : vector<1x64xf32>
    %cst_75 = arith.constant 0.000000e+00 : f32
    %227 = vector.broadcast %cst_75 : f32 to vector<1x64xf32>
    %228 = arith.cmpf olt, %216, %227 : vector<1x64xf32>
    %cst_76 = arith.constant -1.000000e+00 : f32
    %cst_77 = arith.constant 1.000000e+00 : f32
    %229 = vector.broadcast %cst_76 : f32 to vector<1x64xf32>
    %230 = vector.broadcast %cst_77 : f32 to vector<1x64xf32>
    %231 = arith.select %228, %229, %230 : vector<1x64xi1>, vector<1x64xf32>
    %232 = arith.subf %220, %211 : vector<1x64xf32>
    %cst_78 = arith.constant 0.000000e+00 : f32
    %233 = vector.broadcast %cst_78 : f32 to vector<1x64xf32>
    %234 = arith.maximumf %232, %233 : vector<1x64xf32>
    %cst_79 = arith.constant 5.000000e-01 : f32
    %235 = vector.broadcast %cst_79 : f32 to vector<1x64xf32>
    %236 = arith.mulf %234, %235 : vector<1x64xf32>
    %237 = math.sqrt %236 : vector<1x64xf32>
    %238 = arith.mulf %231, %237 : vector<1x64xf32>
    %cst_80 = arith.constant 2.000000e+00 : f32
    %239 = vector.broadcast %cst_80 : f32 to vector<1x64xf32>
    %240 = arith.mulf %239, %226 : vector<1x64xf32>
    %cst_81 = arith.constant 3.000000e+01 : f32
    %241 = vector.broadcast %cst_81 : f32 to vector<1x64xf32>
    %242 = arith.minimumf %240, %241 : vector<1x64xf32>
    %243 = math.exp %242 : vector<1x64xf32>
    %cst_82 = arith.constant 0.000000e+00 : f32
    %244 = vector.broadcast %cst_82 : f32 to vector<1x64xf32>
    %245 = arith.subf %244, %242 : vector<1x64xf32>
    %246 = math.exp %245 : vector<1x64xf32>
    %247 = arith.subf %243, %246 : vector<1x64xf32>
    %cst_83 = arith.constant 5.000000e-01 : f32
    %248 = vector.broadcast %cst_83 : f32 to vector<1x64xf32>
    %249 = arith.mulf %248, %247 : vector<1x64xf32>
    %250 = arith.addf %243, %246 : vector<1x64xf32>
    %cst_84 = arith.constant 5.000000e-01 : f32
    %251 = vector.broadcast %cst_84 : f32 to vector<1x64xf32>
    %252 = arith.mulf %251, %250 : vector<1x64xf32>
    %cst_85 = arith.constant 2.000000e+00 : f32
    %253 = vector.broadcast %cst_85 : f32 to vector<1x64xf32>
    %254 = arith.mulf %253, %238 : vector<1x64xf32>
    %cst_86 = arith.constant 0.636619746 : f32
    %255 = vector.broadcast %cst_86 : f32 to vector<1x64xf32>
    %256 = arith.mulf %254, %255 : vector<1x64xf32>
    %cst_87 = arith.constant 5.000000e-01 : f32
    %257 = vector.broadcast %cst_87 : f32 to vector<1x64xf32>
    %258 = arith.addf %256, %257 : vector<1x64xf32>
    %259 = math.floor %258 : vector<1x64xf32>
    %cst_88 = arith.constant 1.57079637 : f32
    %260 = vector.broadcast %cst_88 : f32 to vector<1x64xf32>
    %261 = arith.mulf %259, %260 : vector<1x64xf32>
    %262 = arith.subf %254, %261 : vector<1x64xf32>
    %263 = arith.mulf %262, %262 : vector<1x64xf32>
    %cst_89 = arith.constant -1.98412701E-4 : f32
    %264 = vector.broadcast %cst_89 : f32 to vector<1x64xf32>
    %265 = arith.mulf %263, %264 : vector<1x64xf32>
    %cst_90 = arith.constant 0.00833333377 : f32
    %266 = vector.broadcast %cst_90 : f32 to vector<1x64xf32>
    %267 = arith.addf %266, %265 : vector<1x64xf32>
    %268 = arith.mulf %263, %267 : vector<1x64xf32>
    %cst_91 = arith.constant -0.166666672 : f32
    %269 = vector.broadcast %cst_91 : f32 to vector<1x64xf32>
    %270 = arith.addf %269, %268 : vector<1x64xf32>
    %271 = arith.mulf %263, %270 : vector<1x64xf32>
    %cst_92 = arith.constant 1.000000e+00 : f32
    %272 = vector.broadcast %cst_92 : f32 to vector<1x64xf32>
    %273 = arith.addf %272, %271 : vector<1x64xf32>
    %274 = arith.mulf %262, %273 : vector<1x64xf32>
    %cst_93 = arith.constant 2.48015876E-5 : f32
    %275 = vector.broadcast %cst_93 : f32 to vector<1x64xf32>
    %276 = arith.mulf %263, %275 : vector<1x64xf32>
    %cst_94 = arith.constant -0.00138888892 : f32
    %277 = vector.broadcast %cst_94 : f32 to vector<1x64xf32>
    %278 = arith.addf %277, %276 : vector<1x64xf32>
    %279 = arith.mulf %263, %278 : vector<1x64xf32>
    %cst_95 = arith.constant 0.0416666679 : f32
    %280 = vector.broadcast %cst_95 : f32 to vector<1x64xf32>
    %281 = arith.addf %280, %279 : vector<1x64xf32>
    %282 = arith.mulf %263, %281 : vector<1x64xf32>
    %cst_96 = arith.constant -5.000000e-01 : f32
    %283 = vector.broadcast %cst_96 : f32 to vector<1x64xf32>
    %284 = arith.addf %283, %282 : vector<1x64xf32>
    %285 = arith.mulf %263, %284 : vector<1x64xf32>
    %cst_97 = arith.constant 1.000000e+00 : f32
    %286 = vector.broadcast %cst_97 : f32 to vector<1x64xf32>
    %287 = arith.addf %286, %285 : vector<1x64xf32>
    %288 = arith.fptosi %259 : vector<1x64xf32> to vector<1x64xi32>
    %c3_i32_98 = arith.constant 3 : i32
    %289 = vector.broadcast %c3_i32_98 : i32 to vector<1x64xi32>
    %290 = arith.andi %288, %289 : vector<1x64xi32>
    %c0_i32_99 = arith.constant 0 : i32
    %291 = vector.broadcast %c0_i32_99 : i32 to vector<1x64xi32>
    %292 = arith.cmpi eq, %290, %291 : vector<1x64xi32>
    %c1_i32_100 = arith.constant 1 : i32
    %293 = vector.broadcast %c1_i32_100 : i32 to vector<1x64xi32>
    %294 = arith.cmpi eq, %290, %293 : vector<1x64xi32>
    %c2_i32_101 = arith.constant 2 : i32
    %295 = vector.broadcast %c2_i32_101 : i32 to vector<1x64xi32>
    %296 = arith.cmpi eq, %290, %295 : vector<1x64xi32>
    %cst_102 = arith.constant 0.000000e+00 : f32
    %297 = vector.broadcast %cst_102 : f32 to vector<1x64xf32>
    %298 = arith.subf %297, %274 : vector<1x64xf32>
    %cst_103 = arith.constant 0.000000e+00 : f32
    %299 = vector.broadcast %cst_103 : f32 to vector<1x64xf32>
    %300 = arith.subf %299, %287 : vector<1x64xf32>
    %301 = arith.select %296, %298, %300 : vector<1x64xi1>, vector<1x64xf32>
    %302 = arith.select %294, %287, %301 : vector<1x64xi1>, vector<1x64xf32>
    %303 = arith.select %292, %274, %302 : vector<1x64xi1>, vector<1x64xf32>
    %c0_i32_104 = arith.constant 0 : i32
    %304 = vector.broadcast %c0_i32_104 : i32 to vector<1x64xi32>
    %305 = arith.cmpi eq, %290, %304 : vector<1x64xi32>
    %c1_i32_105 = arith.constant 1 : i32
    %306 = vector.broadcast %c1_i32_105 : i32 to vector<1x64xi32>
    %307 = arith.cmpi eq, %290, %306 : vector<1x64xi32>
    %cst_106 = arith.constant 0.000000e+00 : f32
    %308 = vector.broadcast %cst_106 : f32 to vector<1x64xf32>
    %309 = arith.subf %308, %274 : vector<1x64xf32>
    %c2_i32_107 = arith.constant 2 : i32
    %310 = vector.broadcast %c2_i32_107 : i32 to vector<1x64xi32>
    %311 = arith.cmpi eq, %290, %310 : vector<1x64xi32>
    %cst_108 = arith.constant 0.000000e+00 : f32
    %312 = vector.broadcast %cst_108 : f32 to vector<1x64xf32>
    %313 = arith.subf %312, %287 : vector<1x64xf32>
    %314 = arith.select %311, %313, %274 : vector<1x64xi1>, vector<1x64xf32>
    %315 = arith.select %307, %309, %314 : vector<1x64xi1>, vector<1x64xf32>
    %316 = arith.select %305, %287, %315 : vector<1x64xi1>, vector<1x64xf32>
    %317 = arith.addf %252, %316 : vector<1x64xf32>
    %318 = tpu.reciprocal %317 {approx = true} : vector<1x64xf32> -> vector<1x64xf32>
    %319 = arith.mulf %249, %318 : vector<1x64xf32>
    %320 = arith.mulf %303, %318 : vector<1x64xf32>
    %cst_109 = arith.constant 9.99999993E-9 : f32
    %321 = vector.broadcast %cst_109 : f32 to vector<1x64xf32>
    %322 = arith.addf %226, %321 : vector<1x64xf32>
    %323 = arith.mulf %319, %203 : vector<1x64xf32>
    %324 = arith.mulf %320, %206 : vector<1x64xf32>
    %325 = arith.subf %323, %324 : vector<1x64xf32>
    %326 = arith.mulf %319, %206 : vector<1x64xf32>
    %327 = arith.mulf %320, %203 : vector<1x64xf32>
    %328 = arith.addf %326, %327 : vector<1x64xf32>
    %329 = arith.mulf %322, %322 : vector<1x64xf32>
    %330 = arith.mulf %238, %238 : vector<1x64xf32>
    %331 = arith.addf %329, %330 : vector<1x64xf32>
    %332 = tpu.reciprocal %331 {approx = true} : vector<1x64xf32> -> vector<1x64xf32>
    %333 = arith.mulf %325, %322 : vector<1x64xf32>
    %334 = arith.mulf %328, %238 : vector<1x64xf32>
    %335 = arith.addf %333, %334 : vector<1x64xf32>
    %336 = arith.mulf %335, %332 : vector<1x64xf32>
    %337 = arith.mulf %328, %322 : vector<1x64xf32>
    %338 = arith.mulf %325, %238 : vector<1x64xf32>
    %339 = arith.subf %337, %338 : vector<1x64xf32>
    %340 = arith.mulf %339, %332 : vector<1x64xf32>
    %341 = vector.broadcast %336 : vector<1x64xf32> to vector<32x64xf32>
    %342 = arith.mulf %11, %341 : vector<32x64xf32>
    %343 = vector.broadcast %340 : vector<1x64xf32> to vector<32x64xf32>
    %344 = arith.mulf %13, %343 : vector<32x64xf32>
    %345 = arith.subf %342, %344 : vector<32x64xf32>
    %cst_110 = arith.constant dense<0.000000e+00> : vector<32x4xf32>
    %346 = tpu.matmul %345, %27, %cst_110 {dimension_numbers = #tpu.dot_dimension_numbers<[1], [0], [0], [1], [0, 0, 1, 1], [], []>} : vector<32x64xf32>, vector<64x4xf32>, vector<32x4xf32> -> vector<32x4xf32>
    %347 = vector.broadcast %340 : vector<1x64xf32> to vector<32x64xf32>
    %348 = arith.mulf %11, %347 : vector<32x64xf32>
    %349 = vector.broadcast %336 : vector<1x64xf32> to vector<32x64xf32>
    %350 = arith.mulf %13, %349 : vector<32x64xf32>
    %351 = arith.addf %348, %350 : vector<32x64xf32>
    %cst_111 = arith.constant dense<0.000000e+00> : vector<32x4xf32>
    %352 = tpu.matmul %351, %27, %cst_111 {dimension_numbers = #tpu.dot_dimension_numbers<[1], [0], [0], [1], [0, 0, 1, 1], [], []>} : vector<32x64xf32>, vector<64x4xf32>, vector<32x4xf32> -> vector<32x4xf32>
    %353 = arith.mulf %346, %346 : vector<32x4xf32>
    %354 = arith.mulf %352, %352 : vector<32x4xf32>
    %355 = arith.addf %353, %354 : vector<32x4xf32>
    %cst_112 = arith.constant dense<0xFF800000> : vector<32xf32>
    %356 = vector.multi_reduction <maximumf>, %355, %cst_112 [1] : vector<32x4xf32> to vector<32xf32>
    %357 = vector.shape_cast %356 : vector<32xf32> to vector<32x1xf32>
    %358 = vector.broadcast %357 : vector<32x1xf32> to vector<32x4xf32>
    %359 = arith.subf %355, %358 : vector<32x4xf32>
    %360 = math.exp %359 : vector<32x4xf32>
    %cst_113 = arith.constant dense<0.000000e+00> : vector<32xf32>
    %361 = vector.multi_reduction <add>, %360, %cst_113 [1] : vector<32x4xf32> to vector<32xf32>
    %362 = vector.shape_cast %361 : vector<32xf32> to vector<32x1xf32>
    %363 = tpu.reciprocal %362 {approx = true} : vector<32x1xf32> -> vector<32x1xf32>
    %364 = vector.broadcast %363 : vector<32x1xf32> to vector<32x4xf32>
    %365 = arith.mulf %360, %364 : vector<32x4xf32>
    %cst_114 = arith.constant dense<0.000000e+00> : vector<32x64xf32>
    %366 = tpu.matmul %365, %41, %cst_114 {dimension_numbers = #tpu.dot_dimension_numbers<[1], [0], [0], [1], [0, 0, 1, 1], [], []>} : vector<32x4xf32>, vector<4x64xf32>, vector<32x64xf32> -> vector<32x64xf32>
    %367 = arith.mulf %366, %11 : vector<32x64xf32>
    %cst_115 = arith.constant dense<0.000000e+00> : vector<64xf32>
    %368 = vector.multi_reduction <add>, %367, %cst_115 [0] : vector<32x64xf32> to vector<64xf32>
    %369 = vector.shape_cast %368 : vector<64xf32> to vector<1x64xf32>
    %370 = arith.mulf %369, %369 : vector<1x64xf32>
    %cst_116 = arith.constant dense<0.000000e+00> : vector<1x4xf32>
    %371 = tpu.matmul %370, %27, %cst_116 {dimension_numbers = #tpu.dot_dimension_numbers<[1], [0], [0], [1], [0, 0, 1, 1], [], []>} : vector<1x64xf32>, vector<64x4xf32>, vector<1x4xf32> -> vector<1x4xf32>
    %cst_117 = arith.constant dense<0.000000e+00> : vector<1x64xf32>
    %372 = tpu.matmul %371, %41, %cst_117 {dimension_numbers = #tpu.dot_dimension_numbers<[1], [0], [0], [1], [0, 0, 1, 1], [], []>} : vector<1x4xf32>, vector<4x64xf32>, vector<1x64xf32> -> vector<1x64xf32>
    %373 = math.sqrt %372 : vector<1x64xf32>
    %374 = math.tanh %373 : vector<1x64xf32>
    %375 = arith.mulf %374, %369 : vector<1x64xf32>
    %cst_118 = arith.constant 9.99999993E-9 : f32
    %376 = vector.broadcast %cst_118 : f32 to vector<1x64xf32>
    %377 = arith.addf %373, %376 : vector<1x64xf32>
    %378 = tpu.reciprocal %377 {approx = true} : vector<1x64xf32> -> vector<1x64xf32>
    %379 = arith.mulf %375, %378 : vector<1x64xf32>
    %c0_119 = arith.constant 0 : index
    %c0_120 = arith.constant 0 : index
    %c0_121 = arith.constant 0 : index
    %380 = vector.load %arg5[%c0_119, %c0_120, %c0_121] : memref<1x1x64xf32, #tpu.memory_space<vmem>>, vector<1x1x64xf32>
    %381 = vector.shape_cast %380 : vector<1x1x64xf32> to vector<1x64xf32>
    %382 = vector.shape_cast %379 : vector<1x64xf32> to vector<1x1x64xf32>
    tpu.vector_store %arg5[%c0_119, %c0_120, %c0_121], %382 {strides = array<i32>} : memref<1x1x64xf32, #tpu.memory_space<vmem>>, vector<1x1x64xf32>,
    return
  }
  func.func @transform_0(%arg0: i32) -> (i32, i32, i32) {
    %c0_i32 = arith.constant 0 : i32
    %c0_i32_0 = arith.constant 0 : i32
    %c0_i32_1 = arith.constant 0 : i32
    return %arg0, %c0_i32, %c0_i32_0 : i32, i32, i32
  }
  func.func @transform_1(%arg0: i32) -> (i32, i32, i32) {
    %c0_i32 = arith.constant 0 : i32
    %c0_i32_0 = arith.constant 0 : i32
    %c0_i32_1 = arith.constant 0 : i32
    return %arg0, %c0_i32, %c0_i32_0 : i32, i32, i32
  }
  func.func @transform_2(%arg0: i32) -> (i32, i32) {
    %c0_i32 = arith.constant 0 : i32
    %c0_i32_0 = arith.constant 0 : i32
    %c0_i32_1 = arith.constant 0 : i32
    return %c0_i32, %c0_i32_0 : i32, i32
  }
  func.func @transform_3(%arg0: i32) -> (i32, i32) {
    %c0_i32 = arith.constant 0 : i32
    %c0_i32_0 = arith.constant 0 : i32
    %c0_i32_1 = arith.constant 0 : i32
    return %c0_i32, %c0_i32_0 : i32, i32
  }
  func.func @transform_4(%arg0: i32) -> (i32, i32, i32) {
    %c0_i32 = arith.constant 0 : i32
    %c0_i32_0 = arith.constant 0 : i32
    %c0_i32_1 = arith.constant 0 : i32
    return %arg0, %c0_i32, %c0_i32_0 : i32, i32, i32
  }
}

</mosaic_0001>

<bundles_post_ra>
// kernel: custom-call.1
= control target key start
LH: loop header
LB: loop body
LE: loop exit
PB: predicated region body
PF: predicated region fallthrough
CT: control target
= control target key end

     0   :  { %s59_s0 = inlined_call_operand.hbm [shape: c64[2,32,8], index: 0, kind: input, shape index: {}]   ;;  %s60_s1 = inlined_call_operand.vmem [shape: f32[2,32,8], index: 1, kind: output, shape index: {}]  }
   0x1   :  { %s2_s8 = scalar_lea.hbm %s59_s0, 256 }
   0x2   :  { %3 = vsyncpa [#allocation0], 0  ;;  %s4_s11 = sshll.u32 %s60_s1, 4  ;;  %s34_s14 = scalar_lea.hbm %s59_s0, 512  ;;  %s5_s11 = int_to_ptr.vmem [resolvable:$true] %s4_s11 }
   0x3   :  { %p11_p0 = scmp.ne.s32.totalorder %s2_s8, %s34_s14  ;;  %p13_p1 = scmp.lt.u32.totalorder %s2_s8, %s59_s0 }
   0x4   :  { %p14_p2 = scmp.lt.u32.totalorder %s34_s14, %s34_s14  ;;  %p16_p4 = scmp.lt.u32.totalorder %s34_s14, %s2_s8 }
   0x6   :  { %p15_p3 = por %p14_p2, %p13_p1 }
   0x8   :  { %p17_p5 = por %p16_p4, %p15_p3 }
   0xa   :  { %p18_p6 = pnand %p17_p5, %p11_p0 }
   0xc   :  { %21 = shalt.err (!%p18_p6)  }
   0xd   :  { %s22_s17 = scalar_lea.vmem %s5_s11, 256  ;;  %p27_p8 = scmp.lt.s32.totalorder %s5_s11, %s5_s11 }
   0xe   :  { %p23_p7 = scmp.ne.s32.totalorder %s5_s11, %s22_s17  ;;  %p28_p9 = scmp.lt.s32.totalorder %s22_s17, %s22_s17 }
  0x10   :  { %p29_p10 = por %p28_p9, %p27_p8 }
  0x12   :  { %p30_p11 = pnand %p29_p10, %p23_p7 }
  0x14   :  { %33 = shalt.err (!%p30_p11)  }
  0x15   :  { %7 = dma.hbm_to_vmem [thread:$0]  %s2_s8, 256, %s5_s11, [#allocation0] }
  0x16   :  { %35 = dma.done.wait [#allocation0], 256  }
  0x17   :  { %36 = vsyncadd [#allocation0], 4294967040 }
  0x18   :  { %9 = vsyncpa [#allocation0], 1 }

// kernel: custom-call
= control target key start
LH: loop header
LB: loop body
LE: loop exit
PB: predicated region body
PF: predicated region fallthrough
CT: control target
= control target key end

     0   :  { %2 = vsyncpa [#allocation0], 0  ;;  %s61_s0 = inlined_call_operand.hbm [shape: c64[2,32,8], index: 0, kind: input, shape index: {}]   ;;  %s62_s1 = inlined_call_operand.vmem [shape: f32[2,32,8], index: 1, kind: output, shape index: {}]  }
   0x1   :  { %s3_s8 = sshll.u32 %s62_s1, 4  ;;  %s9_s11 = scalar_lea.hbm %s61_s0, 256  ;;  %s4_s8 = int_to_ptr.vmem [resolvable:$true] %s3_s8 }
   0x2   :  { %p10_p0 = scmp.ne.s32.totalorder %s61_s0, %s9_s11  ;;  %s11_s16 = scalar_lea.hbm %s61_s0, 512 }
   0x3   :  { %p12_p1 = scmp.lt.u32.totalorder %s11_s16, %s9_s11  ;;  %p13_p2 = scmp.lt.u32.totalorder %s9_s11, %s61_s0 }
   0x5   :  { %p14_p3 = por %p13_p2, %p12_p1 }
   0x7   :  { %p15_p4 = pnand %p14_p3, %p10_p0 }
   0x9   :  { %18 = shalt.err (!%p15_p4)  }
   0xa   :  { %s19_s1 = scalar_lea.vmem %s4_s8, 256  ;;  %p24_p6 = scmp.lt.s32.totalorder %s4_s8, %s4_s8 }
   0xb   :  { %p20_p5 = scmp.ne.s32.totalorder %s4_s8, %s19_s1  ;;  %p25_p7 = scmp.lt.s32.totalorder %s19_s1, %s19_s1 }
   0xd   :  { %p26_p8 = por %p25_p7, %p24_p6 }
   0xf   :  { %p27_p9 = pnand %p26_p8, %p20_p5 }
  0x11   :  { %30 = shalt.err (!%p27_p9)  }
  0x12   :  { %6 = dma.hbm_to_vmem [thread:$0]  %s61_s0, 256, %s4_s8, [#allocation0] }
  0x13   :  { %31 = dma.done.wait [#allocation0], 256  }
  0x14   :  { %32 = vsyncadd [#allocation0], 4294967040 }
  0x15   :  { %8 = vsyncpa [#allocation0], 1 }

// kernel: custom-call.3
= control target key start
LH: loop header
LB: loop body
LE: loop exit
PB: predicated region body
PF: predicated region fallthrough
CT: control target
= control target key end

     0   :  { %s59_s0 = inlined_call_operand.hbm [shape: c64[1,4,32,16,8], index: 0, kind: input, shape index: {}]   ;;  %s60_s1 = inlined_call_operand.vmem [shape: f32[1,4,32,16,8], index: 1, kind: output, shape index: {}]  }
   0x1   :  { %s2_s8 = scalar_lea.hbm %s59_s0, 8192 }
   0x2   :  { %3 = vsyncpa [#allocation0], 0  ;;  %s4_s11 = sshll.u32 %s60_s1, 4  ;;  %s34_s14 = scalar_lea.hbm %s59_s0, 16384  ;;  %s5_s11 = int_to_ptr.vmem [resolvable:$true] %s4_s11 }
   0x3   :  { %p11_p0 = scmp.ne.s32.totalorder %s2_s8, %s34_s14  ;;  %p13_p1 = scmp.lt.u32.totalorder %s2_s8, %s59_s0 }
   0x4   :  { %p14_p2 = scmp.lt.u32.totalorder %s34_s14, %s34_s14  ;;  %p16_p4 = scmp.lt.u32.totalorder %s34_s14, %s2_s8 }
   0x6   :  { %p15_p3 = por %p14_p2, %p13_p1 }
   0x8   :  { %p17_p5 = por %p16_p4, %p15_p3 }
   0xa   :  { %p18_p6 = pnand %p17_p5, %p11_p0 }
   0xc   :  { %21 = shalt.err (!%p18_p6)  }
   0xd   :  { %s22_s17 = scalar_lea.vmem %s5_s11, 8192  ;;  %p27_p8 = scmp.lt.s32.totalorder %s5_s11, %s5_s11 }
   0xe   :  { %p23_p7 = scmp.ne.s32.totalorder %s5_s11, %s22_s17  ;;  %p28_p9 = scmp.lt.s32.totalorder %s22_s17, %s22_s17 }
  0x10   :  { %p29_p10 = por %p28_p9, %p27_p8 }
  0x12   :  { %p30_p11 = pnand %p29_p10, %p23_p7 }
  0x14   :  { %33 = shalt.err (!%p30_p11)  }
  0x15   :  { %7 = dma.hbm_to_vmem [thread:$0]  %s2_s8, 8192, %s5_s11, [#allocation0] }
  0x16   :  { %35 = dma.done.wait [#allocation0], 8192  }
  0x17   :  { %36 = vsyncadd [#allocation0], 4294959104 }
  0x18   :  { %9 = vsyncpa [#allocation0], 1 }

// kernel: custom-call.2
= control target key start
LH: loop header
LB: loop body
LE: loop exit
PB: predicated region body
PF: predicated region fallthrough
CT: control target
= control target key end

     0   :  { %2 = vsyncpa [#allocation0], 0  ;;  %s61_s0 = inlined_call_operand.hbm [shape: c64[1,4,32,16,8], index: 0, kind: input, shape index: {}]   ;;  %s62_s1 = inlined_call_operand.vmem [shape: f32[1,4,32,16,8], index: 1, kind: output, shape index: {}]  }
   0x1   :  { %s3_s8 = sshll.u32 %s62_s1, 4  ;;  %s9_s11 = scalar_lea.hbm %s61_s0, 8192  ;;  %s4_s8 = int_to_ptr.vmem [resolvable:$true] %s3_s8 }
   0x2   :  { %p10_p0 = scmp.ne.s32.totalorder %s61_s0, %s9_s11  ;;  %s11_s16 = scalar_lea.hbm %s61_s0, 16384 }
   0x3   :  { %p12_p1 = scmp.lt.u32.totalorder %s11_s16, %s9_s11  ;;  %p13_p2 = scmp.lt.u32.totalorder %s9_s11, %s61_s0 }
   0x5   :  { %p14_p3 = por %p13_p2, %p12_p1 }
   0x7   :  { %p15_p4 = pnand %p14_p3, %p10_p0 }
   0x9   :  { %18 = shalt.err (!%p15_p4)  }
   0xa   :  { %s19_s1 = scalar_lea.vmem %s4_s8, 8192  ;;  %p24_p6 = scmp.lt.s32.totalorder %s4_s8, %s4_s8 }
   0xb   :  { %p20_p5 = scmp.ne.s32.totalorder %s4_s8, %s19_s1  ;;  %p25_p7 = scmp.lt.s32.totalorder %s19_s1, %s19_s1 }
   0xd   :  { %p26_p8 = por %p25_p7, %p24_p6 }
   0xf   :  { %p27_p9 = pnand %p26_p8, %p20_p5 }
  0x11   :  { %30 = shalt.err (!%p27_p9)  }
  0x12   :  { %6 = dma.hbm_to_vmem [thread:$0]  %s61_s0, 8192, %s4_s8, [#allocation0] }
  0x13   :  { %31 = dma.done.wait [#allocation0], 8192  }
  0x14   :  { %32 = vsyncadd [#allocation0], 4294959104 }
  0x15   :  { %8 = vsyncpa [#allocation0], 1 }

// kernel: digitcaps_forward.1
= control target key start
LH: loop header
LB: loop body
LE: loop exit
PB: predicated region body
PF: predicated region fallthrough
CT: control target
= control target key end

     0   :  { %s3266_s15 = smov 0   ;;  %s4228_s0 = inlined_call_operand.vmem [shape: f32[2,32,256], index: 0, kind: input, shape index: {}]   ;;  %s4229_s1 = inlined_call_operand.vmem [shape: f32[2,32,256], index: 1, kind: input, shape index: {}]   ;;  %s4230_s2 = inlined_call_operand.vmem [shape: f32[256,64], index: 2, kind: input, shape index: {}]   ;;  %s4231_s3 = inlined_call_operand.vmem [shape: f32[256,64], index: 3, kind: input, shape index: {}]   ;;  %s4232_s4 = inlined_call_operand.vmem [shape: f32[2,1,64], index: 4, kind: output, shape index: {}]  }
   0x1 LB: > { %s2392_s16 = sadd.s32 4294967295, %s3234_s15   ;;  %p2396_p0 = scmp.ge.s32.totalorder %s3234_s15, 1  ;;  %s3234_s15 = sphi %s3266_s15, %s14_s15  }
   0x2   : > { %p172_p1 = scmp.lt.s32.totalorder %s3234_s15, 3 }
   0x4   : > { %p173_p2 = pnand %p2396_p0, %p172_p1 }
   0x6   : > { %176 = sbr.rel (%p173_p2) target bundleno = 3629 (0xe2d), region = 36 }
   0xd   : > { %v3277_v0 = vld [vmem:[%s4230_s2 + $0x80] sm:$0xff]  ;;  %v3282_v1 = vld [vmem:[%s4230_s2 + $0x88] sm:$0xff]  ;;  %v3323_v11 = vld [vmem:[%s4230_s2 + $0x90] sm:$0xff]  ;;  %p3416_p3 = scmp.lt.s32.totalorder %s2392_s16, 1 }
   0xe   : > { %v3287_v2 = vld [vmem:[%s4231_s3 + $0x80] sm:$0xff]  ;;  %v2941_v3 = vpack.c.bf16 %v3282_v1, %v3277_v0  ;;  %v3294_v4 = vld [vmem:[%s4231_s3 + $0x88] sm:$0xff]  ;;  %v3330_v13 = vld [vmem:[%s4230_s2 + $0x98] sm:$0xff] }
   0xf   : > { %v3299_v5 = vld [vmem:[%s4230_s2] sm:$0xff]  ;;  %v3304_v6 = vld [vmem:[%s4230_s2 + $0x8] sm:$0xff]  ;;  %v2973_v7 = vpack.c.bf16 %v3294_v4, %v3287_v2  ;;  %v3335_v14 = vld [vmem:[%s4231_s3 + $0x90] sm:$0xff]  ;;  %v2945_v16 = vpack.c.bf16 %v3330_v13, %v3323_v11  ;;  %s4270_s16 = smov (!%p3416_p3, %s2392_s16), 1 }
  0x10   : > { %v2943_v8 = vpack.c.bf16 %v3304_v6, %v3299_v5  ;;  %v3313_v9 = vld [vmem:[%s4231_s3] sm:$0xff]  ;;  %v3318_v10 = vld [vmem:[%s4231_s3 + $0x8] sm:$0xff]  ;;  %2942 = vmatprep.subr.bf16.mxu0 %v2941_v3  ;;  %v3340_v15 = vld [vmem:[%s4231_s3 + $0x98] sm:$0xff]  ;;  %s2504_s8 = sshll.u32 %s4270_s16, 6 }
  0x11   : > { %v2975_v12 = vpack.c.bf16 %v3318_v10, %v3313_v9  ;;  %2974 = vmatprep.subr.bf16.mxu1 %v2973_v7  ;;  %v2977_v17 = vpack.c.bf16 %v3340_v15, %v3335_v14  ;;  %v3349_v18 = vld [vmem:[%s4230_s2 + $0x10] sm:$0xff]  ;;  %v3354_v19 = vld [vmem:[%s4230_s2 + $0x18] sm:$0xff]  ;;  %v3371_v23 = vld [vmem:[%s4230_s2 + $0xa0] sm:$0xff]  ;;  %s3584_s25 = scalar_lea.vmem %s4228_s0, %s2504_s8  ;;  %s3589_s28 = scalar_lea.vmem %s4229_s1, %s2504_s8 }
  0x12   : > { %2944 = vmatpush3.bf16.msra.mxu0 %v2943_v8  ;;  %v3359_v20 = vld [vmem:[%s4231_s3 + $0x10] sm:$0xff]  ;;  %v2947_v21 = vpack.c.bf16 %v3354_v19, %v3349_v18  ;;  %v3366_v22 = vld [vmem:[%s4231_s3 + $0x18] sm:$0xff]  ;;  %v3376_v24 = vld [vmem:[%s4230_s2 + $0xa8] sm:$0xff]  ;;  %s213_s8 = scalar_lea.vmem %s4232_s4, %s4270_s16 }
  0x13   : > { %2976 = vmatpush3.bf16.msra.mxu1 %v2975_v12  ;;  %2946 = vmatprep.subr.bf16.mxu0 %v2945_v16  ;;  %v2979_v25 = vpack.c.bf16 %v3366_v22, %v3359_v20  ;;  %v2949_v26 = vpack.c.bf16 %v3376_v24, %v3371_v23  ;;  %v3385_v27 = vld [vmem:[%s4231_s3 + $0xa0] sm:$0xff]  ;;  %v3390_v28 = vld [vmem:[%s4231_s3 + $0xa8] sm:$0xff]  ;;  %v3425_v35 = vld [vmem:[%s4230_s2 + $0xb0] sm:$0xff] }
  0x14   : > { %2978 = vmatprep.subr.bf16.mxu1 %v2977_v17  ;;  %v3395_v29 = vld [vmem:[%s4230_s2 + $0x20] sm:$0xff]  ;;  %v2981_v30 = vpack.c.bf16 %v3390_v28, %v3385_v27  ;;  %v3402_v31 = vld [vmem:[%s4230_s2 + $0x28] sm:$0xff]  ;;  %v3430_v36 = vld [vmem:[%s4230_s2 + $0xb8] sm:$0xff] }
  0x15   : > { %v3407_v32 = vld [vmem:[%s4231_s3 + $0x20] sm:$0xff]  ;;  %v3412_v33 = vld [vmem:[%s4231_s3 + $0x28] sm:$0xff]  ;;  %v2951_v34 = vpack.c.bf16 %v3402_v31, %v3395_v29  ;;  %v3435_v37 = vld [vmem:[%s4231_s3 + $0xb0] sm:$0xff]  ;;  %v2953_v39 = vpack.c.bf16 %v3430_v36, %v3425_v35 }
  0x16   : > { %2948 = vmatpush3.bf16.msra.mxu0 %v2947_v21  ;;  %v2983_v38 = vpack.c.bf16 %v3412_v33, %v3407_v32  ;;  %v3444_v40 = vld [vmem:[%s4231_s3 + $0xb8] sm:$0xff]  ;;  %v3449_v41 = vld [vmem:[%s4230_s2 + $0x30] sm:$0xff]  ;;  %v3471_v46 = vld [vmem:[%s4230_s2 + $0xc0] sm:$0xff] }
  0x17   : > { %2980 = vmatpush3.bf16.msra.mxu1 %v2979_v25  ;;  %2950 = vmatprep.subr.bf16.mxu0 %v2949_v26  ;;  %v3454_v42 = vld [vmem:[%s4230_s2 + $0x38] sm:$0xff]  ;;  %v2985_v43 = vpack.c.bf16 %v3444_v40, %v3435_v37  ;;  %v3461_v44 = vld [vmem:[%s4231_s3 + $0x30] sm:$0xff]  ;;  %v3476_v47 = vld [vmem:[%s4230_s2 + $0xc8] sm:$0xff] }
  0x18   : > { %2982 = vmatprep.subr.bf16.mxu1 %v2981_v30  ;;  %v3466_v45 = vld [vmem:[%s4231_s3 + $0x38] sm:$0xff]  ;;  %v3481_v48 = vld [vmem:[%s4231_s3 + $0xc0] sm:$0xff]  ;;  %v3486_v49 = vld [vmem:[%s4231_s3 + $0xc8] sm:$0xff]  ;;  %v2955_v50 = vpack.c.bf16 %v3454_v42, %v3449_v41  ;;  %v2957_v52 = vpack.c.bf16 %v3476_v47, %v3471_v46 }
  0x19   : > { %v2987_v51 = vpack.c.bf16 %v3466_v45, %v3461_v44  ;;  %v3503_v53 = vld [vmem:[%s4230_s2 + $0x40] sm:$0xff]  ;;  %v3508_v54 = vld [vmem:[%s4230_s2 + $0x48] sm:$0xff]  ;;  %v2989_v56 = vpack.c.bf16 %v3486_v49, %v3481_v48  ;;  %v3525_v58 = vld [vmem:[%s4230_s2 + $0xd0] sm:$0xff] }
  0x1a   : > { %2952 = vmatpush3.bf16.msra.mxu0 %v2951_v34  ;;  %v3513_v55 = vld [vmem:[%s4231_s3 + $0x40] sm:$0xff]  ;;  %v3520_v57 = vld [vmem:[%s4231_s3 + $0x48] sm:$0xff]  ;;  %v3530_v59 = vld [vmem:[%s4230_s2 + $0xd8] sm:$0xff]  ;;  %v2959_v62 = vpack.c.bf16 %v3508_v54, %v3503_v53 }
  0x1b   : > { %2984 = vmatpush3.bf16.msra.mxu1 %v2983_v38  ;;  %2954 = vmatprep.subr.bf16.mxu0 %v2953_v39  ;;  %v3535_v60 = vld [vmem:[%s4231_s3 + $0xd0] sm:$0xff]  ;;  %v3540_v61 = vld [vmem:[%s4231_s3 + $0xd8] sm:$0xff]  ;;  %v2991_v63 = vpack.c.bf16 %v3520_v57, %v3513_v55  ;;  %v2961_v3 = vpack.c.bf16 %v3530_v59, %v3525_v58  ;;  %v3574_v21 = vld [vmem:[%s4230_s2 + $0xe0] sm:$0xff] }
  0x1c   : > { %2986 = vmatprep.subr.bf16.mxu1 %v2985_v43  ;;  %v3552_v7 = vld [vmem:[%s4230_s2 + $0x50] sm:$0xff]  ;;  %v3557_v8 = vld [vmem:[%s4230_s2 + $0x58] sm:$0xff]  ;;  %v2993_v16 = vpack.c.bf16 %v3540_v61, %v3535_v60  ;;  %4247 = vst [vmem:[#allocation6_spill] sm:$0xff] %v3574_v21  ;;  %v3579_v25 = vld [vmem:[%s4230_s2 + $0xe8] sm:$0xff] }
  0x1d   : > { %4243 = vst [vmem:[#allocation2_spill] sm:$0xff] %v3552_v7  ;;  %4244 = vst [vmem:[#allocation3_spill] sm:$0xff] %v3557_v8  ;;  %v3562_v12 = vld [vmem:[%s4231_s3 + $0x50] sm:$0xff]  ;;  %v3569_v17 = vld [vmem:[%s4231_s3 + $0x58] sm:$0xff]  ;;  %v2963_v34 = vpack.c.bf16 %v3557_v8, %v3552_v7 }
  0x1e   : > { %2956 = vmatpush3.bf16.msra.mxu0 %v2955_v50  ;;  %4245 = vst [vmem:[#allocation4_spill] sm:$0xff] %v3562_v12  ;;  %4246 = vst [vmem:[#allocation5_spill] sm:$0xff] %v3569_v17  ;;  %v3594_v26 = vld [vmem:[%s4231_s3 + $0xe0] sm:$0xff]  ;;  %v3599_v30 = vld [vmem:[%s4231_s3 + $0xe8] sm:$0xff]  ;;  %v2995_v43 = vpack.c.bf16 %v3569_v17, %v3562_v12  ;;  %v2965_v50 = vpack.c.bf16 %v3579_v25, %v3574_v21  ;;  %v489_v17 = vadd.f32 %v3294_v4, %v3282_v1 }
  0x1f   : > { %2988 = vmatpush3.bf16.msra.mxu1 %v2987_v51  ;;  %2958 = vmatprep.subr.bf16.mxu0 %v2957_v52  ;;  %4248 = vst [vmem:[#allocation7_spill] sm:$0xff] %v3579_v25  ;;  %4249 = vst [vmem:[#allocation8_spill] sm:$0xff] %v3594_v26  ;;  %v3606_v38 = vld [vmem:[%s4230_s2 + $0x60] sm:$0xff]  ;;  %v3611_v39 = vld [vmem:[%s4230_s2 + $0x68] sm:$0xff] }
  0x20   : > { %2990 = vmatprep.subr.bf16.mxu1 %v2989_v56  ;;  %4250 = vst [vmem:[#allocation9_spill] sm:$0xff] %v3599_v30  ;;  %v3620_v51 = vld [vmem:[%s4231_s3 + $0x60] sm:$0xff]  ;;  %v3623_v52 = vld [vmem:[%s3584_s25 + $0x8] sm:$0xff]  ;;  %v3643_v25 = vld [vmem:[%s4230_s2 + $0xf8] sm:$0xff]  ;;  %v2967_v21 = vpack.c.bf16 %v3611_v39, %v3606_v38 }
  0x21   : > { %v3626_v56 = vld [vmem:[%s3589_s28 + $0x8] sm:$0xff]  ;;  %358 = vmatprep.mubr.f32.mxu0 %v3623_v52  ;;  %v3670_v7 = vld [vmem:[%s4230_s2 + $0x70] sm:$0xff]  ;;  %v3687_v4 = vld [vmem:[%s4231_s3 + $0x78] sm:$0xff] }
  0x22   : > { %2960 = vmatpush3.bf16.msra.mxu0 %v2959_v62  ;;  %v2997_v62 = vpack.c.bf16 %v3599_v30, %v3594_v26  ;;  %v3654_v30 = vld [vmem:[%s4231_s3 + $0xf8] sm:$0xff]  ;;  %443 = vmatprep.mubr.f32.mxu1 %v3626_v56  ;;  %v488_v26 = vadd.f32 %v3287_v2, %v3277_v0  ;;  %v3682_v2 = vld [vmem:[%s4231_s3 + $0x70] sm:$0xff] }
  0x23   : > { %2992 = vmatpush3.bf16.msra.mxu1 %v2991_v63  ;;  %2962 = vmatprep.subr.bf16.mxu0 %v2961_v3  ;;  %v3633_v63 = vld [vmem:[%s4231_s3 + $0x68] sm:$0xff]  ;;  %v3638_v3 = vld [vmem:[%s4230_s2 + $0xf0] sm:$0xff]  ;;  %4251 = vst [vmem:[#allocation10_spill] sm:$0xff] %v3654_v30  ;;  %v3675_v0 = vld [vmem:[%s4230_s2 + $0x78] sm:$0xff] }
  0x24   : > { %2994 = vmatprep.subr.bf16.mxu1 %v2993_v16  ;;  %v3649_v16 = vld [vmem:[%s4231_s3 + $0xf0] sm:$0xff]  ;;  %v2999_v8 = vpack.c.bf16 %v3633_v63, %v3620_v51  ;;  %v2969_v12 = vpack.c.bf16 %v3643_v25, %v3638_v3 }
  0x25   : > { %v3001_v1 = vpack.c.bf16 %v3654_v30, %v3649_v16  ;;  %v3005_v30 = vpack.c.bf16 %v489_v17, %v488_v26  ;;  %v3709_v17 = vld [vmem:[%s3589_s28] sm:$0xff] }
  0x26   : > { %2964 = vmatpush3.bf16.msra.mxu0 %v2963_v34  ;;  %v472_v34 = vadd.f32 %v3313_v9, %v3299_v5  ;;  %v490_v5 = vadd.f32 %v3335_v14, %v3323_v11  ;;  %v3712_v11 = vld [vmem:[%s3584_s25 + $0x18] sm:$0xff]  ;;  %v218_v26 = vld [vmem:[%s3584_s25 + $0x20] sm:$0xff] }
  0x27   : > { %2996 = vmatpush3.bf16.msra.mxu1 %v2995_v43  ;;  %2966 = vmatprep.subr.bf16.mxu0 %v2965_v50  ;;  %v473_v43 = vadd.f32 %v3318_v10, %v3304_v6  ;;  %v2971_v50 = vpack.c.bf16 %v3675_v0, %v3670_v7  ;;  %v491_v6 = vadd.f32 %v3340_v15, %v3330_v13  ;;  %v3715_v13 = vld [vmem:[%s3589_s28 + $0x18] sm:$0xff] }
  0x28   : > { %2998 = vmatprep.subr.bf16.mxu1 %v2997_v62  ;;  %v3003_v62 = vpack.c.bf16 %v3687_v4, %v3682_v2  ;;  %v474_v10 = vadd.f32 %v3359_v20, %v3349_v18  ;;  %v492_v15 = vadd.f32 %v3385_v27, %v3371_v23  ;;  %v493_v18 = vadd.f32 %v3390_v28, %v3376_v24  ;;  %v3733_v23 = vld [vmem:[%s3589_s28 + $0x10] sm:$0xff]  ;;  %v3736_v24 = vld [vmem:[%s3584_s25 + $0x28] sm:$0xff] }
  0x29   : > { %v3007_v9 = vpack.c.bf16 %v473_v43, %v472_v34  ;;  %v3009_v14 = vpack.c.bf16 %v491_v6, %v490_v5  ;;  %v477_v20 = vadd.f32 %v3412_v33, %v3402_v31  ;;  %v3739_v27 = vld [vmem:[%s3589_s28 + $0x28] sm:$0xff]  ;;  %v495_v31 = vadd.f32 %v3444_v40, %v3430_v36  ;;  %v221_v40 = vld [vmem:[%s3584_s25 + $0x38] sm:$0xff] }
  0x2a   : > { %2968 = vmatpush3.bf16.msra.mxu0 %v2967_v21  ;;  %v3013_v28 = vpack.c.bf16 %v493_v18, %v492_v15  ;;  %v479_v33 = vadd.f32 %v3466_v45, %v3454_v42  ;;  %v496_v36 = vadd.f32 %v3481_v48, %v3471_v46  ;;  %v481_v45 = vadd.f32 %v3520_v57, %v3508_v54  ;;  %v228_v48 = vld [vmem:[%s3589_s28 + $0x30] sm:$0xff]  ;;  %v4252_v54 = vld [vmem:[#allocation2_spill] sm:$0xff]  ;;  %v4254_v43 = vld [vmem:[#allocation3_spill] sm:$0xff] }
  0x2b   : > { %3000 = vmatpush3.bf16.msra.mxu1 %v2999_v8  ;;  %2970 = vmatprep.subr.bf16.mxu0 %v2969_v12  ;;  %v475_v8 = vadd.f32 %v3366_v22, %v3354_v19  ;;  %v3706_v12 = vld [vmem:[%s3584_s25] sm:$0xff]  ;;  %v476_v19 = vadd.f32 %v3407_v32, %v3395_v29  ;;  %v3728_v22 = vld [vmem:[%s3584_s25 + $0x10] sm:$0xff]  ;;  %v494_v29 = vadd.f32 %v3435_v37, %v3425_v35  ;;  %v4258_v6 = vld [vmem:[#allocation7_spill] sm:$0xff] }
  0x2c   : > { %3002 = vmatprep.subr.bf16.mxu1 %v3001_v1  ;;  %v478_v32 = vadd.f32 %v3461_v44, %v3449_v41  ;;  %v226_v35 = vld [vmem:[%s3589_s28 + $0x20] sm:$0xff]  ;;  %v497_v37 = vadd.f32 %v3486_v49, %v3476_v47  ;;  %v229_v41 = vld [vmem:[%s3589_s28 + $0x38] sm:$0xff]  ;;  %v480_v44 = vadd.f32 %v3513_v55, %v3503_v53  ;;  %v220_v1 = vld [vmem:[%s3584_s25 + $0x30] sm:$0xff]  ;;  %v498_v46 = vadd.f32 %v3535_v60, %v3525_v58 }
  0x2d   : > { %v3011_v21 = vpack.c.bf16 %v475_v8, %v474_v10  ;;  %v3017_v42 = vpack.c.bf16 %v495_v31, %v494_v29  ;;  %v465_v47 = vadd.f32 %v3626_v56, %v3623_v52  ;;  %v499_v53 = vadd.f32 %v3540_v61, %v3530_v59  ;;  %v4253_v55 = vld [vmem:[#allocation4_spill] sm:$0xff]  ;;  %v4256_v52 = vld [vmem:[#allocation6_spill] sm:$0xff] }
  0x2e   : > { %2972 = vmatpush3.bf16.msra.mxu0 %v2971_v50  ;;  %v3019_v34 = vpack.c.bf16 %v479_v33, %v478_v32  ;;  %v3021_v49 = vpack.c.bf16 %v497_v37, %v496_v36  ;;  %v482_v57 = vadd.f32 %v4253_v55, %v4252_v54  ;;  %v4255_v50 = vld [vmem:[#allocation5_spill] sm:$0xff]  ;;  %v3023_v58 = vpack.c.bf16 %v481_v45, %v480_v44  ;;  %v4257_v56 = vld [vmem:[#allocation8_spill] sm:$0xff]  ;;  %v4260_v18 = vld [vmem:[#allocation10_spill] sm:$0xff] }
  0x2f   : > { %3004 = vmatpush3.bf16.msra.mxu1 %v3003_v62  ;;  %3006 = vmatprep.subr.bf16.mxu0 %v3005_v30  ;;  %v3015_v30 = vpack.c.bf16 %v477_v20, %v476_v19  ;;  %v483_v62 = vadd.f32 %v4255_v50, %v4254_v43  ;;  %v3025_v60 = vpack.c.bf16 %v499_v53, %v498_v46  ;;  %v3237_v29 = vmov 1.0|1.0  }
  0x30   : > { %v500_v5 = vadd.f32 %v4257_v56, %v4256_v52  ;;  %v484_v59 = vadd.f32 %v3620_v51, %v3606_v38  ;;  %v485_v61 = vadd.f32 %v3633_v63, %v3611_v39  ;;  %v502_v15 = vadd.f32 %v3649_v16, %v3638_v3 }
  0x31   : > { %359 = vmatmul.mubr.f32.vlgmr.msra.gmra.mrb[0].mxu0 %v3706_v12  ;;  %v3027_v8 = vpack.c.bf16 %v483_v62, %v482_v57  ;;  %v503_v19 = vadd.f32 %v4260_v18, %v3643_v25  ;;  %v486_v20 = vadd.f32 %v3682_v2, %v3670_v7  ;;  %v464_v63 = vadd.f32 %v3709_v17, %v3706_v12 }
  0x32   : > { %444 = vmatmul.mubr.f32.vlgmr.msra.gmra.mrb[0].mxu1 %v3709_v17  ;;  %3008 = vmatpush3.bf16.msra.mxu0 %v3007_v9  ;;  %v4259_v9 = vld [vmem:[#allocation9_spill] sm:$0xff]  ;;  %v3031_v38 = vpack.c.bf16 %v485_v61, %v484_v59  ;;  %v467_v3 = vadd.f32 %v3715_v13, %v3712_v11  ;;  %v466_v7 = vadd.f32 %v3733_v23, %v3728_v22  ;;  %v3239_v36 = vmov 0.0  }
  0x33   : > { %363 = vmatprep.mubr.f32.mxu0 %v3712_v11  ;;  %448 = vmatprep.mubr.f32.mxu1 %v3715_v13  ;;  %v501_v10 = vadd.f32 %v4259_v9, %v4258_v6  ;;  %v3033_v39 = vpack.c.bf16 %v503_v19, %v502_v15  ;;  %v469_v25 = vadd.f32 %v3739_v27, %v3736_v24 }
  0x34   : > { %3010 = vmatprep.subr.bf16.mxu0 %v3009_v14  ;;  %v468_v16 = vadd.f32 %v226_v35, %v218_v26  ;;  %v470_v2 = vadd.f32 %v228_v48, %v220_v1 }
  0x35   : > { %364 = vmatmul.mubr.f32.gmra.mrb[2].mxu0 %v3728_v22  ;;  %v3029_v14 = vpack.c.bf16 %v501_v10, %v500_v5 }
  0x36   : > { %449 = vmatmul.mubr.f32.gmra.mrb[2].mxu1 %v3733_v23  ;;  %3012 = vmatpush3.bf16.msra.mxu0 %v3011_v21  ;;  %v487_v21 = vadd.f32 %v3687_v4, %v3675_v0  ;;  %v471_v0 = vadd.f32 %v229_v41, %v221_v40  ;;  %v601_v4 = vlaneseq  ;;  %v3236_v23 = vmov 0.0|0.0  }
  0x37   : > { %368 = vmatprep.mubr.f32.mxu0 %v3736_v24  ;;  %453 = vmatprep.mubr.f32.mxu1 %v3739_v27 }
  0x38   : > { %3014 = vmatprep.subr.bf16.mxu0 %v3013_v28  ;;  %v3035_v51 = vpack.c.bf16 %v487_v21, %v486_v20  ;;  %v3801_v12 = vand.u32 127, %v601_v4  ;;  %v3803_v17 = vshrl.u32 %v601_v4, 7  ;;  %3037 = vmatprep.subr.bf16.mxu1 %v3236_v23 }
  0x39   : > { %369 = vmatmul.mubr.f32.gmra.mrb[4].mxu0 %v218_v26 }
  0x3a   : > { %454 = vmatmul.mubr.f32.gmra.mrb[4].mxu1 %v226_v35  ;;  %3016 = vmatpush3.bf16.msra.mxu0 %v3015_v30  ;;  %v612_v11 = vmul.u32 16, %v3801_v12  ;;  %v603_v13 = vadd.s32 8, %v3803_v17  ;;  %v604_v24 = vadd.s32 16, %v3803_v17  ;;  %v605_v27 = vadd.s32 24, %v3803_v17 }
  0x3b   : > { %373 = vmatprep.mubr.f32.mxu0 %v221_v40  ;;  %458 = vmatprep.mubr.f32.mxu1 %v229_v41  ;;  %v606_v31 = vadd.s32 32, %v3803_v17  ;;  %v607_v32 = vadd.s32 40, %v3803_v17  ;;  %v608_v26 = vadd.s32 48, %v3803_v17  ;;  %v609_v30 = vadd.s32 56, %v3803_v17 }
  0x3c   : > { %3018 = vmatprep.subr.bf16.mxu0 %v3017_v42  ;;  %v621_v22 = vadd.s32 16, %v612_v11  ;;  %vm613_vm0 = vcmp.ge.s32.totalorder %v3803_v17, %v612_v11  ;;  %vm614_vm1 = vcmp.ge.s32.totalorder %v603_v13, %v612_v11  ;;  %vm615_vm7 = vcmp.ge.s32.totalorder %v604_v24, %v612_v11 }
  0x3d   : > { %374 = vmatmul.mubr.f32.gmra.mrb[6].mxu0 %v220_v1  ;;  %vm616_vm8 = vcmp.ge.s32.totalorder %v605_v27, %v612_v11  ;;  %vm617_vm14 = vcmp.ge.s32.totalorder %v606_v31, %v612_v11  ;;  %vm618_vm15 = vcmp.ge.s32.totalorder %v607_v32, %v612_v11 }
  0x3e   : > { %459 = vmatmul.mubr.f32.gmra.mrb[6].mxu1 %v228_v48  ;;  %3020 = vmatpush3.bf16.msra.mxu0 %v3019_v34  ;;  %vm622_vm2 = vcmp.lt.s32.totalorder %v3803_v17, %v621_v22  ;;  %vm623_vm3 = vcmp.lt.s32.totalorder %v603_v13, %v621_v22  ;;  %vm624_vm9 = vcmp.lt.s32.totalorder %v604_v24, %v621_v22 }
  0x3f   : > { %3022 = vmatprep.subr.bf16.mxu0 %v3021_v49  ;;  %568 = vmatprep.mubr.f32.mxu0 %v465_v47  ;;  %vm630_vm4 = vmand %vm613_vm0, %vm622_vm2  ;;  %vm625_vm10 = vcmp.lt.s32.totalorder %v605_v27, %v621_v22  ;;  %vm626_vm0 = vcmp.lt.s32.totalorder %v606_v31, %v621_v22 }
  0x40   : > { %vm631_vm5 = vmand %vm614_vm1, %vm623_vm3  ;;  %vm627_vm1 = vcmp.lt.s32.totalorder %v607_v32, %v621_v22 }
  0x41   : > { %vm3812_vm6 = vmpackc.low %vm631_vm5, %vm630_vm4  ;;  %vm619_vm5 = vcmp.ge.s32.totalorder %v608_v26, %v612_v11 }
  0x42   : > { %3024 = vmatpush3.bf16.msra.mxu0 %v3023_v58  ;;  %3039 = vmatpush3.bf16.msk.msra.mxu1 %vm3812_vm6, %v3237_v29  ;;  %vm632_vm11 = vmand %vm615_vm7, %vm624_vm9  ;;  %vm620_vm7 = vcmp.ge.s32.totalorder %v609_v30, %v612_v11  ;;  %vm629_vm9 = vcmp.lt.s32.totalorder %v609_v30, %v621_v22 }
  0x43   : > { %3026 = vmatprep.subr.bf16.mxu0 %v3025_v60  ;;  %3040 = vmatprep.subr.bf16.mxu1 %v3236_v23  ;;  %vm633_vm12 = vmand %vm616_vm8, %vm625_vm10  ;;  %vm628_vm8 = vcmp.lt.s32.totalorder %v608_v26, %v621_v22 }
  0x44   : > { %vm3828_vm13 = vmpackc.low %vm633_vm12, %vm632_vm11  ;;  %vm3238_vm11 = vmmov 0  }
  0x45   : > { %vm634_vm2 = vmand %vm617_vm14, %vm626_vm0  ;;  %2755 = vmatprep.mubr.msk.f32.mxu1 %vm3238_vm11, %v3239_v36 }
  0x46   : > { %3028 = vmatpush3.bf16.msra.mxu0 %v3027_v8  ;;  %3042 = vmatpush3.bf16.msk.msra.mxu1 %vm3828_vm13, %v3237_v29  ;;  %vm635_vm3 = vmand %vm618_vm15, %vm627_vm1  ;;  %vm652_vm15 = vcmask 523264  }
  0x47   : > { %3030 = vmatprep.subr.bf16.mxu0 %v3029_v14  ;;  %3043 = vmatprep.subr.bf16.mxu1 %v3236_v23  ;;  %vm3844_vm4 = vmpackc.low %vm635_vm3, %vm634_vm2  ;;  %vm761_vm3 = vcmask 1043456  }
  0x48   : > { %vm636_vm10 = vmand %vm619_vm5, %vm628_vm8  ;;  %vm757_vm5 = vcmask 31744  }
  0x49   : > { %vm637_vm12 = vmand %vm620_vm7, %vm629_vm9 }
  0x4a   : > { %3032 = vmatpush3.bf16.msra.mxu0 %v3031_v38  ;;  %3045 = vmatpush3.bf16.msk.msra.mxu1 %vm3844_vm4, %v3237_v29  ;;  %vm3857_vm14 = vmpackc.low %vm637_vm12, %vm636_vm10 }
  0x4b   : > { %3034 = vmatprep.subr.bf16.mxu0 %v3033_v39  ;;  %3046 = vmatprep.subr.bf16.mxu1 %v3236_v23 }
  0x4e   : > { %3036 = vmatpush3.bf16.msra.mxu0 %v3035_v51  ;;  %3048 = vmatpush3.bf16.msk.msra.mxu1 %vm3857_vm14, %v3237_v29 }
  0x4f   : > { %3062 = vmatprep.subr.msk.bf16.mxu0 %vm3812_vm6, %v3237_v29  ;;  %2758 = vmatprep.subr.mxu1 %v3239_v36 }
  0x51   : > { %569 = vmatmul.mubr.f32.vlgmr.msra.gmra.mrb[8].mxu0 %v464_v63 }
  0x52   : > { %573 = vmatprep.mubr.f32.mxu0 %v467_v3  ;;  %3064 = vmatpush3.bf16.msk.msra.mxu0 %vm3812_vm6, %v3237_v29 }
  0x53   : > { %3066 = vmatprep.subr.msk.bf16.mxu0 %vm3828_vm13, %v3237_v29 }
  0x55   : > { %574 = vmatmul.mubr.f32.gmra.mrb[10].mxu0 %v466_v7 }
  0x56   : > { %578 = vmatprep.mubr.f32.mxu0 %v469_v25  ;;  %3068 = vmatpush3.bf16.msk.msra.mxu0 %vm3828_vm13, %v3237_v29 }
  0x57   : > { %3070 = vmatprep.subr.msk.bf16.mxu0 %vm3844_vm4, %v3237_v29 }
  0x59   : > { %579 = vmatmul.mubr.f32.gmra.mrb[12].mxu0 %v468_v16 }
  0x5a   : > { %583 = vmatprep.mubr.f32.mxu0 %v471_v0  ;;  %3072 = vmatpush3.bf16.msk.msra.mxu0 %vm3844_vm4, %v3237_v29 }
  0x5b   : > { %3074 = vmatprep.subr.msk.bf16.mxu0 %vm3857_vm14, %v3237_v29 }
  0x5d   : > { %584 = vmatmul.mubr.f32.gmra.mrb[14].mxu0 %v470_v2 }
  0x5e   : > { %3076 = vmatpush3.bf16.msk.msra.mxu0 %vm3857_vm14, %v3237_v29 }
  0x5f   : > { %3089 = vmatprep.subr.bf16.mxu0 %v3236_v23 }
 0x104   : > { %v2538_v40 = vpop.f32.mrb[0].mxu0 }
 0x105   : > { %v2582_v41 = vpop.f32.mrb[0].mxu1  ;;  %v2539_v42 = vpop.f32.mrb[1].mxu0 }
 0x106   : > { %v2540_v44 = vadd.f32 %v2539_v42, %v2538_v40  ;;  %v2583_v45 = vpop.f32.mrb[1].mxu1 }
 0x107   : > { %v2584_v1 = vadd.f32 %v2583_v45, %v2582_v41 }
 0x108   : > { %v2541_v34 = vpop.f32.mrb[2].mxu0 }
 0x109   : > { %v3875_v46 = vsub.f32 %v2540_v44, %v2584_v1  ;;  %v2585_v47 = vpop.f32.mrb[2].mxu1  ;;  %v2542_v48 = vpop.f32.mrb[3].mxu0 }
 0x10a   : > { %v2543_v49 = vadd.f32 %v2542_v48, %v2541_v34  ;;  %v2586_v53 = vpop.f32.mrb[3].mxu1 }
 0x10b   : > { %v2587_v54 = vadd.f32 %v2586_v53, %v2585_v47  ;;  %v653_v14 = vsel %vm652_vm15, %v3875_v46, 0.0 }
 0x10c   : > { %v2544_v55 = vpop.f32.mrb[4].mxu0 }
 0x10d   : > { %v3877_v57 = vsub.f32 %v2543_v49, %v2587_v54  ;;  %v2588_v43 = vpop.f32.mrb[4].mxu1  ;;  %v2545_v50 = vpop.f32.mrb[5].mxu0 }
 0x10e   : > { %v2546_v62 = vadd.f32 %v2545_v50, %v2544_v55  ;;  %v2589_v58 = vpop.f32.mrb[5].mxu1  ;;  %v646_v50 = vmul.u32 16, %v3803_v17 }
 0x10f   : > { %v2590_v60 = vadd.f32 %v2589_v58, %v2588_v43  ;;  %v654_v8 = vsel %vm652_vm15, %v3877_v57, 0.0 }
 0x110   : > { %v2547_v52 = vpop.f32.mrb[6].mxu0  ;;  %v655_v19 = vadd.f32 %v654_v8, %v653_v14  ;;  %vm647_vm0 = vcmp.ge.s32.totalorder %v3801_v12, %v646_v50 }
 0x111   : > { %v3879_v56 = vsub.f32 %v2546_v62, %v2590_v60  ;;  %v2591_v5 = vpop.f32.mrb[6].mxu1  ;;  %v2548_v6 = vpop.f32.mrb[7].mxu0 }
 0x112   : > { %v2549_v9 = vadd.f32 %v2548_v6, %v2547_v52  ;;  %v2592_v10 = vpop.f32.mrb[7].mxu1  ;;  %v648_v52 = vadd.s32 16, %v646_v50 }
 0x113   : > { %v2593_v59 = vadd.f32 %v2592_v10, %v2591_v5  ;;  %v656_v15 = vsel %vm652_vm15, %v3879_v56, 0.0 }
 0x114   : > { %v657_v39 = vadd.f32 %v656_v15, %v655_v19  ;;  %vm649_vm1 = vcmp.lt.s32.totalorder %v3801_v12, %v648_v52 }
 0x115   : > { %v3881_v61 = vsub.f32 %v2549_v9, %v2593_v59  ;;  %vm650_vm2 = vmand %vm647_vm0, %vm649_vm1 }
 0x116   : > { %v3919_v15 = vsel %vm650_vm2, 1.0, %v3239_v36 }
 0x117   : > { %v658_v21 = vsel %vm652_vm15, %v3881_v61, 0.0 }
 0x118   : > { %v659_v3 = vadd.f32 %v658_v21, %v657_v39 }
 0x11a   : > { %v660_v4 = vrot.slane %v659_v3, 4 }
 0x11c   : > { %v661_v31 = vadd.f32 %v660_v4, %v659_v3 }
 0x11e   : > { %v662_v45 = vrot.slane %v661_v31, 2 }
 0x124   : > { %v2626_v18 = vpop.f32.mrb[8].mxu0 }
 0x125   : > { %v2627_v20 = vpop.f32.mrb[9].mxu0 }
 0x126   : > { %v2628_v38 = vadd.f32 %v2627_v20, %v2626_v18 }
 0x128   : > { %v593_v51 = vsub.f32 %v2628_v38, %v2540_v44  ;;  %v2629_v63 = vpop.f32.mrb[10].mxu0 }
 0x129   : > { %v2630_v7 = vpop.f32.mrb[11].mxu0 }
 0x12a   : > { %v3891_v25 = vsub.f32 %v593_v51, %v2584_v1  ;;  %v2631_v16 = vadd.f32 %v2630_v7, %v2629_v63 }
 0x12c   : > { %v594_v0 = vsub.f32 %v2631_v16, %v2543_v49  ;;  %v2632_v2 = vpop.f32.mrb[12].mxu0  ;;  %v667_v41 = vsel %vm652_vm15, %v3891_v25, 0.0  ;;  %v663_v49 = vadd.f32 %v662_v45, %v661_v31 }
 0x12d   : > { %v2633_v11 = vpop.f32.mrb[13].mxu0 }
 0x12e   : > { %v3893_v13 = vsub.f32 %v594_v0, %v2587_v54  ;;  %v2634_v22 = vadd.f32 %v2633_v11, %v2632_v2  ;;  %v664_v55 = vrot.slane %v663_v49, 1 }
 0x130   : > { %v595_v24 = vsub.f32 %v2634_v22, %v2546_v62  ;;  %v2635_v27 = vpop.f32.mrb[14].mxu0  ;;  %v668_v26 = vsel %vm652_vm15, %v3893_v13, 0.0  ;;  %v665_v58 = vadd.f32 %v664_v55, %v663_v49  ;;  %v3240_v55 = vmov 1.0  }
 0x131   : > { %v2636_v32 = vpop.f32.mrb[15].mxu0  ;;  %v669_v1 = vadd.f32 %v668_v26, %v667_v41 }
 0x132   : > { %v3897_v30 = vsub.f32 %v595_v24, %v2590_v60  ;;  %v2637_v40 = vadd.f32 %v2636_v32, %v2635_v27 }
 0x134   : > { %v670_v42 = vsel %vm652_vm15, %v3897_v30, 0.0  ;;  %v596_v44 = vsub.f32 %v2637_v40, %v2549_v9  ;;  %v3908_v9 = vmul.f32 0.25, %v665_v58 }
 0x135   : > { %v671_v47 = vadd.f32 %v670_v42, %v669_v1 }
 0x136   : > { %v3903_v34 = vsub.f32 %v596_v44, %v2593_v59  ;;  %v681_v59 = vmul.f32 %v3908_v9, %v3908_v9  ;;  %v835_v19 = vmul.f32 2.0, %v3908_v9 }
 0x138   : > { %v672_v48 = vsel %vm652_vm15, %v3903_v34, 0.0 }
 0x139   : > { %v673_v53 = vadd.f32 %v672_v48, %v671_v47 }
 0x13b   : > { %v674_v54 = vrot.slane %v673_v53, 4 }
 0x13d   : > { %v675_v43 = vadd.f32 %v674_v54, %v673_v53 }
 0x13f   : > { %v676_v62 = vrot.slane %v675_v43, 2 }
 0x141   : > { %v677_v60 = vadd.f32 %v676_v62, %v675_v43 }
 0x143   : > { %v678_v5 = vrot.slane %v677_v60, 1 }
 0x145   : > { %v679_v6 = vadd.f32 %v678_v5, %v677_v60 }
 0x147   : > { %v3912_v10 = vmul.f32 0.25, %v679_v6 }
 0x149   : > { %v682_v8 = vmul.f32 %v3912_v10, %v3912_v10  ;;  %v836_v20 = vmul.f32 %v835_v19, %v3912_v10 }
 0x14b   : > { %v683_v14 = vsub.f32 %v681_v59, %v682_v8 }
 0x14d   : > { %2756 = vmatmul.mubr.msk.f32.vlgmr.msra.gmra.mrb[8].mxu1 %vm652_vm15, %v683_v14 }
 0x14e   : > { %2759 = vmatpush3.msk.msra.mxu1 %vm761_vm3, %v3919_v15  ;;  %2760 = vmatprep.mubr.msk.f32.mxu1 %vm3238_vm11, %v3239_v36 }
 0x14f   : > { %3049 = vmatprep.subr.bf16.mxu1 %v3236_v23 }
 0x220   : > { %v753_v12 = vpop.f32.mrb[8].mxu1 }
 0x221   : > { %v2757_v18 = vpop.f32.mrb[9].mxu1  ;;  %2761 = vmatmul.mubr.msk.f32.vlgmr.msra.gmra.mrb[10].mxu1 %vm757_vm5, %v753_v12 }
 0x222   : > { %3051 = vmatpush3.bf16.msk.msra.mxu1 %vm3812_vm6, %v3237_v29  ;;  %2779 = vmatprep.mubr.msk.f32.mxu1 %vm3238_vm11, %v3239_v36 }
 0x223   : > { %3052 = vmatprep.subr.bf16.mxu1 %v3236_v23 }
 0x226   : > { %3054 = vmatpush3.bf16.msk.msra.mxu1 %vm3828_vm13, %v3237_v29 }
 0x227   : > { %3055 = vmatprep.subr.bf16.mxu1 %v3236_v23 }
 0x22a   : > { %3057 = vmatpush3.bf16.msk.msra.mxu1 %vm3844_vm4, %v3237_v29 }
 0x22b   : > { %3058 = vmatprep.subr.bf16.mxu1 %v3236_v23 }
 0x22e   : > { %3060 = vmatpush3.bf16.msk.msra.mxu1 %vm3857_vm14, %v3237_v29 }
 0x22f   : > { %2782 = vmatprep.subr.mxu1 %v3239_v36 }
 0x231   : > { %2780 = vmatmul.mubr.msk.f32.vlgmr.msra.gmra.mrb[12].mxu1 %vm652_vm15, %v836_v20 }
 0x232   : > { %2783 = vmatpush3.msk.msra.mxu1 %vm761_vm3, %v3919_v15  ;;  %2784 = vmatprep.mubr.msk.f32.mxu1 %vm3238_vm11, %v3239_v36 }
 0x233   : > { %2809 = vmatprep.subr.msk.mxu1 %vm761_vm3, %v3919_v15 }
 0x2f4   : > { %v831_v21 = vpop.f32.mrb[10].mxu1 }
 0x2f5   : > { %v2762_v38 = vpop.f32.mrb[11].mxu1  ;;  %v983_v3 = vmul.f32 %v831_v21, %v831_v21 }
 0x304   : > { %v906_v39 = vpop.f32.mrb[12].mxu1 }
 0x305   : > { %v2781_v51 = vpop.f32.mrb[13].mxu1  ;;  %2785 = vmatmul.mubr.msk.f32.vlgmr.msra.gmra.mrb[14].mxu1 %vm757_vm5, %v906_v39 }
 0x306   : > { %2810 = vmatpush3.msk.msra.mxu1 %vm761_vm3, %v3919_v15 }
 0x307   : > { %3077 = vmatprep.subr.bf16.mxu1 %v3236_v23 }
 0x3d8   : > { %v979_v63 = vpop.f32.mrb[14].mxu1 }
 0x3d9   : > { %v984_v7 = vmul.f32 %v979_v63, %v979_v63  ;;  %v2786_v16 = vpop.f32.mrb[15].mxu1  ;;  %vm1003_vm10 = vcmp.lt.f32.partialorder %v979_v63, 0.0 }
 0x3da   : > { %v1004_v43 = vsel %vm1003_vm10, -1.0, %v3240_v55 }
 0x3db   : > { %v985_v0 = vadd.f32 %v984_v7, %v983_v3 }
 0x3dd   : > { %3162 = vrsqrt.f32 %v985_v0  ;;  %vm988_vm7 = vcmp.eq.f32.partialorder %v985_v0, inf  ;;  %v991_v11 = vand.u32 2147483648, %v985_v0  ;;  %vm990_vm8 = vcmp.eq.f32.partialorder %v985_v0, 0.0 }
 0x3e7   : > { %v3163_v2 = vpop.eup %3162 }
 0x3e8   : > { %v987_v4 = vmul.f32 %v3163_v2, %v985_v0 }
 0x3ea   : > { %v989_v22 = vsel %vm988_vm7, %v985_v0, %v987_v4 }
 0x3eb   : > { %v992_v24 = vsel %vm990_vm8, %v991_v11, %v989_v22 }
 0x3ec   : > { %v993_v27 = vadd.f32 %v992_v24, %v831_v21  ;;  %v1005_v31 = vsub.f32 %v992_v24, %v831_v21 }
 0x3ee   : > { %v994_v32 = vmax.f32 %v993_v27, 0.0  ;;  %v1006_v26 = vmax.f32 %v1005_v31, 0.0 }
 0x3f0   : > { %v995_v40 = vmul.f32 0.5, %v994_v32  ;;  %v1007_v41 = vmul.f32 0.5, %v1006_v26 }
 0x3f2   : > { %3164 = vrsqrt.f32 %v995_v40  ;;  %vm998_vm9 = vcmp.eq.f32.partialorder %v995_v40, inf  ;;  %v1001_v1 = vand.u32 2147483648, %v995_v40  ;;  %vm1000_vm12 = vcmp.eq.f32.partialorder %v995_v40, 0.0 }
 0x3f3   : > { %3166 = vrsqrt.f32 %v1007_v41  ;;  %vm1010_vm0 = vcmp.eq.f32.partialorder %v1007_v41, inf  ;;  %v1013_v49 = vand.u32 2147483648, %v1007_v41  ;;  %vm1012_vm1 = vcmp.eq.f32.partialorder %v1007_v41, 0.0 }
 0x3fc   : > { %v3165_v42 = vpop.eup %3164 }
 0x3fd   : > { %v3167_v44 = vpop.eup %3166  ;;  %v997_v45 = vmul.f32 %v3165_v42, %v995_v40 }
 0x3fe   : > { %v1009_v47 = vmul.f32 %v3167_v44, %v1007_v41 }
 0x3ff   : > { %v999_v48 = vsel %vm998_vm9, %v995_v40, %v997_v45 }
 0x400   : > { %v1002_v53 = vsel %vm1000_vm12, %v1001_v1, %v999_v48  ;;  %v1011_v54 = vsel %vm1010_vm0, %v1007_v41, %v1009_v47 }
 0x401   : > { %v1014_v50 = vsel %vm1012_vm1, %v1013_v49, %v1011_v54  ;;  %v3960_v62 = vadd.f32 1e-08, %v1002_v53  ;;  %v1016_v52 = vmul.f32 2.0, %v1002_v53 }
 0x402   : > { %v3962_v58 = vmul.f32 %v1014_v50, %v1004_v43 }
 0x403   : > { %v1073_v60 = vmul.f32 %v3960_v62, %v3960_v62  ;;  %v1017_v14 = vmin.f32 %v1016_v52, 30.0 }
 0x404   : > { %v1027_v5 = vmul.f32 2.0, %v3962_v58  ;;  %v1074_v6 = vmul.f32 %v3962_v58, %v3962_v58 }
 0x405   : > { %v1020_v19 = vsub.f32 0.0, %v1017_v14  ;;  %v1018_v51 = vmul.f32 1.442695, %v1017_v14 }
 0x406   : > { %v1028_v59 = vmul.f32 0.63661975, %v1027_v5  ;;  %v1075_v8 = vadd.f32 %v1074_v6, %v1073_v60 }
 0x407   : > { %v1021_v38 = vmul.f32 1.442695, %v1020_v19 }
 0x408   : > { %v1029_v12 = vadd.f32 0.5, %v1028_v59 }
 0x409   : > { %3168 = vpow2.f32 %v1021_v38 }
 0x40a   : > { %v1030_v18 = vfloor.f32 %v1029_v12  ;;  %3170 = vpow2.f32 %v1018_v51 }
 0x40c   : > { %v1031_v20 = vmul.f32 1.5707964, %v1030_v18  ;;  %v3145_v4 = vtrunc.f32 %v1030_v18 }
 0x40e   : > { %v1032_v21 = vsub.f32 %v1027_v5, %v1031_v20  ;;  %v3146_v31 = vcvt.f32.s32 %v3145_v4  ;;  %v3978_v4 = vsub.s32 0, %v3803_v17 }
 0x410   : > { %v1033_v39 = vmul.f32 %v1032_v21, %v1032_v21  ;;  %v1050_v44 = vand.u32 3, %v3146_v31 }
 0x412   : > { %v1034_v63 = vmul.f32 -0.0001984127, %v1033_v39  ;;  %v1041_v3 = vmul.f32 2.4801588e-05, %v1033_v39  ;;  %vm1053_vm2 = vcmp.eq.s32.totalorder %v1050_v44, 2  ;;  %vm1052_vm7 = vcmp.eq.s32.totalorder %v1050_v44, 1 }
 0x413   : > { %v3169_v40 = vpop.eup %3168  ;;  %vm1051_vm8 = vcmp.eq.s32.totalorder %v1050_v44, 0 }
 0x414   : > { %v1035_v7 = vadd.f32 0.008333334, %v1034_v63  ;;  %v1042_v16 = vadd.f32 -0.0013888889, %v1041_v3  ;;  %v3171_v45 = vpop.eup %3170 }
 0x415   : > { %v1025_v47 = vadd.f32 %v3171_v45, %v3169_v40  ;;  %v1023_v5 = vsub.f32 %v3171_v45, %v3169_v40 }
 0x416   : > { %v1036_v0 = vmul.f32 %v1035_v7, %v1033_v39  ;;  %v1043_v2 = vmul.f32 %v1042_v16, %v1033_v39 }
 0x417   : > { %v1026_v54 = vmul.f32 0.5, %v1025_v47  ;;  %v1024_v59 = vmul.f32 0.5, %v1023_v5 }
 0x418   : > { %v1037_v11 = vadd.f32 -0.16666667, %v1036_v0  ;;  %v1044_v22 = vadd.f32 0.041666668, %v1043_v2 }
 0x41a   : > { %v1038_v24 = vmul.f32 %v1037_v11, %v1033_v39  ;;  %v1045_v27 = vmul.f32 %v1044_v22, %v1033_v39 }
 0x41c   : > { %v1039_v32 = vadd.f32 1.0, %v1038_v24  ;;  %v1046_v26 = vadd.f32 -0.5, %v1045_v27 }
 0x41e   : > { %v1047_v41 = vmul.f32 %v1046_v26, %v1033_v39  ;;  %v1040_v42 = vmul.f32 %v1039_v32, %v1032_v21 }
 0x420   : > { %v1048_v1 = vadd.f32 1.0, %v1047_v41  ;;  %v1054_v49 = vsub.f32 0.0, %v1040_v42 }
 0x422   : > { %v1055_v48 = vsub.f32 0.0, %v1048_v1 }
 0x424   : > { %v1059_v53 = vsel %vm1053_vm2, %v1055_v48, %v1040_v42  ;;  %v1056_v52 = vsel %vm1053_vm2, %v1054_v49, %v1055_v48 }
 0x425   : > { %v1060_v43 = vsel %vm1052_vm7, %v1054_v49, %v1059_v53  ;;  %v1057_v6 = vsel %vm1052_vm7, %v1048_v1, %v1056_v52 }
 0x426   : > { %v1061_v50 = vsel %vm1051_vm8, %v1048_v1, %v1060_v43  ;;  %v1058_v12 = vsel %vm1051_vm8, %v1040_v42, %v1057_v6 }
 0x427   : > { %v1062_v60 = vadd.f32 %v1061_v50, %v1026_v54 }
 0x429   : > { %3172 = vrcp.f32 %v1062_v60 }
 0x42a   : > { %3174 = vrcp.f32 %v1075_v8 }
 0x433   : > { %v3173_v14 = vpop.eup %3172 }
 0x434   : > { %v1064_v18 = vmul.f32 %v3173_v14, %v1024_v59  ;;  %v1065_v19 = vmul.f32 %v3173_v14, %v1058_v12  ;;  %v3175_v11 = vpop.eup %3174 }
 0x436   : > { %v1067_v20 = vmul.f32 %v1064_v18, %v3908_v9  ;;  %v1068_v21 = vmul.f32 %v1065_v19, %v3912_v10  ;;  %v1070_v38 = vmul.f32 %v1064_v18, %v3912_v10  ;;  %v1071_v39 = vmul.f32 %v1065_v19, %v3908_v9 }
 0x438   : > { %v1069_v51 = vsub.f32 %v1067_v20, %v1068_v21  ;;  %v1072_v63 = vadd.f32 %v1071_v39, %v1070_v38 }
 0x43a   : > { %v1077_v3 = vmul.f32 %v1069_v51, %v3960_v62  ;;  %v1078_v7 = vmul.f32 %v1072_v63, %v3962_v58  ;;  %v1081_v16 = vmul.f32 %v1072_v63, %v3960_v62  ;;  %v1082_v8 = vmul.f32 %v1069_v51, %v3962_v58 }
 0x43c   : > { %v1079_v0 = vadd.f32 %v1078_v7, %v1077_v3  ;;  %v1083_v2 = vsub.f32 %v1081_v16, %v1082_v8 }
 0x43e   : > { %v1080_v22 = vmul.f32 %v3175_v11, %v1079_v0  ;;  %v1084_v10 = vmul.f32 %v3175_v11, %v1083_v2 }
 0x440   : > { %v1088_v9 = vrot.slane %v1080_v22, %v3978_v4  ;;  %v1096_v24 = vrot.slane %v1084_v10, %v3978_v4 }
 0x442   : > { %v1089_v27 = vmul.f32 %v1088_v9, %v3875_v46  ;;  %v1097_v31 = vmul.f32 %v1096_v24, %v3891_v25  ;;  %v1090_v62 = vmul.f32 %v1088_v9, %v3877_v57  ;;  %v1098_v58 = vmul.f32 %v1096_v24, %v3893_v13 }
 0x443   : > { %v1091_v32 = vmul.f32 %v1088_v9, %v3879_v56  ;;  %v1099_v17 = vmul.f32 %v1096_v24, %v3897_v30  ;;  %v1092_v26 = vmul.f32 %v1088_v9, %v3881_v61  ;;  %v1100_v40 = vmul.f32 %v1096_v24, %v3903_v34 }
 0x444   : > { %v1101_v41 = vsub.f32 %v1089_v27, %v1097_v31  ;;  %v1102_v42 = vsub.f32 %v1090_v62, %v1098_v58 }
 0x445   : > { %v1103_v44 = vsub.f32 %v1091_v32, %v1099_v17  ;;  %v1104_v45 = vsub.f32 %v1092_v26, %v1100_v40 }
 0x446   : > { %2803 = vmatprep.mubr.msk.f32.mxu0 %vm652_vm15, %v1101_v41 }
 0x447   : > { %2804 = vmatmul.mubr.msk.f32.vlgmr.msra.gmra.mrb[16].mxu0 %vm652_vm15, %v1102_v42 }
 0x448   : > { %2806 = vmatprep.mubr.msk.f32.mxu0 %vm652_vm15, %v1103_v44  ;;  %3091 = vmatpush3.bf16.msk.msra.mxu0 %vm3812_vm6, %v3237_v29 }
 0x449   : > { %3092 = vmatprep.subr.bf16.mxu0 %v3236_v23 }
 0x44b   : > { %2807 = vmatmul.mubr.msk.f32.gmra.mrb[18].mxu0 %vm652_vm15, %v1104_v45 }
 0x44c   : > { %3094 = vmatpush3.bf16.msk.msra.mxu0 %vm3828_vm13, %v3237_v29  ;;  %2857 = vmatprep.mubr.msk.f32.mxu0 %vm3238_vm11, %v3239_v36 }
 0x44d   : > { %3095 = vmatprep.subr.bf16.mxu0 %v3236_v23 }
 0x450   : > { %3097 = vmatpush3.bf16.msk.msra.mxu0 %vm3844_vm4, %v3237_v29 }
 0x451   : > { %3098 = vmatprep.subr.bf16.mxu0 %v3236_v23 }
 0x454   : > { %3100 = vmatpush3.bf16.msk.msra.mxu0 %vm3857_vm14, %v3237_v29 }
 0x455   : > { %3118 = vmatprep.subr.msk.bf16.mxu0 %vm3812_vm6, %v3237_v29 }
 0x51a   : > { %v2805_v1 = vpop.f32.mrb[16].mxu0 }
 0x51b   : > { %v1183_v47 = vpop.f32.mrb[17].mxu0  ;;  %v1205_v54 = vsel %vm757_vm5, %v2805_v1, -inf }
 0x51c   : > { %v1202_v48 = vsel %vm757_vm5, %v1183_v47, -inf }
 0x51d   : > { %1203 = vmax.xlane.f32.xlu0 %v1202_v48 }
 0x51e   : > { %v2808_v49 = vpop.f32.mrb[18].mxu0 }
 0x51f   : > { %v1193_v53 = vpop.f32.mrb[19].mxu0  ;;  %v1211_v50 = vsel %vm757_vm5, %v2808_v49, -inf }
 0x520   : > { %v1208_v43 = vsel %vm757_vm5, %v1193_v53, -inf }
 0x521   : > { %1206 = vmax.xlane.f32.xlu0 %v1205_v54  ;;  %1209 = vmax.xlane.f32.xlu1 %v1208_v43 }
 0x525   : > { %1212 = vmax.xlane.f32.xlu1 %v1211_v50 }
 0x5aa   : > { %v1204_v60 = vpop.xlane.xlu0 %1203 }
 0x5ab   : > { %v1214_v52 = vsub.f32 %v1183_v47, %v1204_v60 }
 0x5ad   : > { %v1218_v5 = vmul.f32 1.442695, %v1214_v52 }
 0x5ae   : > { %v1207_v6 = vpop.xlane.xlu0 %1206  ;;  %v1210_v59 = vpop.xlane.xlu1 %1209 }
 0x5af   : > { %3176 = vpow2.f32 %v1218_v5  ;;  %v1215_v14 = vsub.f32 %v2805_v1, %v1207_v6  ;;  %v1216_v12 = vsub.f32 %v1193_v53, %v1210_v59 }
 0x5b1   : > { %v1220_v18 = vmul.f32 1.442695, %v1215_v14  ;;  %v1222_v19 = vmul.f32 1.442695, %v1216_v12 }
 0x5b2   : > { %v1213_v20 = vpop.xlane.xlu1 %1212 }
 0x5b3   : > { %3178 = vpow2.f32 %v1220_v18  ;;  %v1217_v21 = vsub.f32 %v2808_v49, %v1213_v20 }
 0x5b4   : > { %3180 = vpow2.f32 %v1222_v19 }
 0x5b5   : > { %v1224_v38 = vmul.f32 1.442695, %v1217_v21 }
 0x5b7   : > { %3182 = vpow2.f32 %v1224_v38 }
 0x5b9   : > { %v3177_v39 = vpop.eup %3176 }
 0x5ba   : > { %v1226_v51 = vsel %vm757_vm5, %v3177_v39, 0.0 }
 0x5bb   : > { %1227 = vadd.xlane.f32.xlu0 %v1226_v51 }
 0x5bd   : > { %v3179_v63 = vpop.eup %3178 }
 0x5be   : > { %v3181_v3 = vpop.eup %3180  ;;  %v1229_v7 = vsel %vm757_vm5, %v3179_v63, 0.0 }
 0x5bf   : > { %1230 = vadd.xlane.f32.xlu1 %v1229_v7  ;;  %v1232_v16 = vsel %vm757_vm5, %v3181_v3, 0.0 }
 0x5c0   : > { %1233 = vadd.xlane.f32.xlu0 %v1232_v16 }
 0x5c1   : > { %v3183_v8 = vpop.eup %3182 }
 0x5c2   : > { %v1235_v0 = vsel %vm757_vm5, %v3183_v8, 0.0 }
 0x5c3   : > { %1236 = vadd.xlane.f32.xlu1 %v1235_v0 }
 0x648   : > { %v1228_v2 = vpop.xlane.xlu0 %1227 }
 0x649   : > { %3184 = vrcp.f32 %v1228_v2 }
 0x64c   : > { %v1231_v11 = vpop.xlane.xlu1 %1230 }
 0x64d   : > { %v1234_v22 = vpop.xlane.xlu0 %1233  ;;  %3186 = vrcp.f32 %v1231_v11 }
 0x64e   : > { %3188 = vrcp.f32 %v1234_v22 }
 0x650   : > { %v1237_v10 = vpop.xlane.xlu1 %1236 }
 0x651   : > { %3190 = vrcp.f32 %v1237_v10 }
 0x653   : > { %v3185_v9 = vpop.eup %3184 }
 0x654   : > { %v1242_v24 = vmul.f32 %v3185_v9, %v3177_v39 }
 0x656   : > { %2811 = vmatprep.mubr.msk.f32.mxu1 %vm757_vm5, %v1242_v24 }
 0x657   : > { %v3187_v27 = vpop.eup %3186 }
 0x658   : > { %v3189_v31 = vpop.eup %3188  ;;  %v1243_v62 = vmul.f32 %v3187_v27, %v3179_v63 }
 0x659   : > { %v1244_v58 = vmul.f32 %v3189_v31, %v3181_v3 }
 0x65a   : > { %2812 = vmatmul.mubr.msk.f32.vlgmr.msra.gmra.mrb[16].mxu1 %vm757_vm5, %v1243_v62 }
 0x65b   : > { %v3191_v32 = vpop.eup %3190  ;;  %2814 = vmatprep.mubr.msk.f32.mxu1 %vm757_vm5, %v1244_v58  ;;  %3079 = vmatpush3.bf16.msk.msra.mxu1 %vm3812_vm6, %v3237_v29 }
 0x65c   : > { %v1245_v17 = vmul.f32 %v3191_v32, %v3183_v8  ;;  %3080 = vmatprep.subr.bf16.mxu1 %v3236_v23 }
 0x65e   : > { %2815 = vmatmul.mubr.msk.f32.gmra.mrb[18].mxu1 %vm757_vm5, %v1245_v17 }
 0x65f   : > { %3082 = vmatpush3.bf16.msk.msra.mxu1 %vm3828_vm13, %v3237_v29  ;;  %2833 = vmatprep.mubr.msk.f32.mxu1 %vm3238_vm11, %v3239_v36 }
 0x660   : > { %3083 = vmatprep.subr.bf16.mxu1 %v3236_v23 }
 0x663   : > { %3085 = vmatpush3.bf16.msk.msra.mxu1 %vm3844_vm4, %v3237_v29 }
 0x664   : > { %3086 = vmatprep.subr.bf16.mxu1 %v3236_v23 }
 0x667   : > { %3088 = vmatpush3.bf16.msk.msra.mxu1 %vm3857_vm14, %v3237_v29 }
 0x668   : > { %2836 = vmatprep.subr.mxu1 %v3239_v36 }
 0x72d   : > { %v2813_v26 = vpop.f32.mrb[16].mxu1 }
 0x72e   : > { %v1344_v40 = vmul.f32 %v2813_v26, %v3877_v57  ;;  %v1361_v41 = vmul.f32 %v2813_v26, %v3893_v13  ;;  %v1324_v42 = vpop.f32.mrb[17].mxu1 }
 0x72f   : > { %v1343_v44 = vmul.f32 %v1324_v42, %v3875_v46  ;;  %v1360_v45 = vmul.f32 %v1324_v42, %v3891_v25 }
 0x730   : > { %v1348_v1 = vsel %vm652_vm15, %v1344_v40, 0.0  ;;  %v1365_v47 = vsel %vm652_vm15, %v1361_v41, 0.0 }
 0x731   : > { %v1347_v48 = vsel %vm652_vm15, %v1343_v44, 0.0  ;;  %v1364_v49 = vsel %vm652_vm15, %v1360_v45, 0.0  ;;  %v2816_v53 = vpop.f32.mrb[18].mxu1 }
 0x732   : > { %v1349_v54 = vadd.f32 %v1348_v1, %v1347_v48  ;;  %v1366_v43 = vadd.f32 %v1365_v47, %v1364_v49  ;;  %v1334_v50 = vpop.f32.mrb[19].mxu1  ;;  %v1346_v60 = vmul.f32 %v2816_v53, %v3881_v61  ;;  %v1363_v52 = vmul.f32 %v2816_v53, %v3903_v34 }
 0x733   : > { %v1345_v5 = vmul.f32 %v1334_v50, %v3879_v56  ;;  %v1362_v6 = vmul.f32 %v1334_v50, %v3897_v30 }
 0x734   : > { %v1352_v19 = vsel %vm652_vm15, %v1346_v60, 0.0  ;;  %v1369_v20 = vsel %vm652_vm15, %v1363_v52, 0.0 }
 0x735   : > { %v1350_v59 = vsel %vm652_vm15, %v1345_v5, 0.0  ;;  %v1367_v14 = vsel %vm652_vm15, %v1362_v6, 0.0 }
 0x736   : > { %v1351_v12 = vadd.f32 %v1350_v59, %v1349_v54  ;;  %v1368_v18 = vadd.f32 %v1367_v14, %v1366_v43 }
 0x738   : > { %v1353_v21 = vadd.f32 %v1352_v19, %v1351_v12  ;;  %v1370_v38 = vadd.f32 %v1369_v20, %v1368_v18 }
 0x73a   : > { %v1354_v39 = vrot.slane %v1353_v21, 4  ;;  %v1371_v51 = vrot.slane %v1370_v38, 4 }
 0x73c   : > { %v1355_v63 = vadd.f32 %v1354_v39, %v1353_v21  ;;  %v1372_v3 = vadd.f32 %v1371_v51, %v1370_v38 }
 0x73e   : > { %v1356_v7 = vrot.slane %v1355_v63, 2  ;;  %v1373_v16 = vrot.slane %v1372_v3, 2 }
 0x740   : > { %v1357_v8 = vadd.f32 %v1356_v7, %v1355_v63  ;;  %v1374_v0 = vadd.f32 %v1373_v16, %v1372_v3 }
 0x742   : > { %v1358_v2 = vrot.slane %v1357_v8, 1  ;;  %v1375_v11 = vrot.slane %v1374_v0, 1 }
 0x744   : > { %v4060_v22 = vadd.f32 %v1358_v2, %v1357_v8  ;;  %v4062_v10 = vadd.f32 %v1375_v11, %v1374_v0 }
 0x746   : > { %v1377_v9 = vmul.f32 %v4060_v22, %v4060_v22  ;;  %v1378_v24 = vmul.f32 %v4062_v10, %v4062_v10  ;;  %v1526_v27 = vmul.f32 2.0, %v4060_v22 }
 0x748   : > { %v1379_v31 = vsub.f32 %v1377_v9, %v1378_v24  ;;  %v1527_v62 = vmul.f32 %v1526_v27, %v4062_v10 }
 0x74a   : > { %2834 = vmatmul.mubr.msk.f32.vlgmr.msra.gmra.mrb[20].mxu1 %vm652_vm15, %v1379_v31  ;;  %2858 = vmatmul.mubr.msk.f32.vlgmr.msra.gmra.mrb[20].mxu0 %vm652_vm15, %v1527_v62 }
 0x74b   : > { %2837 = vmatpush3.msk.msra.mxu1 %vm761_vm3, %v3919_v15  ;;  %2838 = vmatprep.mubr.msk.f32.mxu1 %vm3238_vm11, %v3239_v36 }
 0x74c   : > { %2860 = vmatprep.subr.mxu1 %v3239_v36  ;;  %3120 = vmatpush3.bf16.msk.msra.mxu0 %vm3812_vm6, %v3237_v29 }
 0x74d   : > { %3122 = vmatprep.subr.msk.bf16.mxu0 %vm3828_vm13, %v3237_v29 }
 0x750   : > { %3124 = vmatpush3.bf16.msk.msra.mxu0 %vm3828_vm13, %v3237_v29 }
 0x751   : > { %3126 = vmatprep.subr.msk.bf16.mxu0 %vm3844_vm4, %v3237_v29 }
 0x754   : > { %3128 = vmatpush3.bf16.msk.msra.mxu0 %vm3844_vm4, %v3237_v29 }
 0x755   : > { %3130 = vmatprep.subr.msk.bf16.mxu0 %vm3857_vm14, %v3237_v29 }
 0x758   : > { %3132 = vmatpush3.bf16.msk.msra.mxu0 %vm3857_vm14, %v3237_v29 }
 0x759   : > { %3133 = vmatprep.subr.bf16.mxu0 %v3236_v23 }
 0x81d   : > { %v1449_v58 = vpop.f32.mrb[20].mxu1  ;;  %v1597_v32 = vpop.f32.mrb[20].mxu0 }
 0x81e   : > { %v2835_v17 = vpop.f32.mrb[21].mxu1  ;;  %2839 = vmatmul.mubr.msk.f32.vlgmr.msra.gmra.mrb[22].mxu1 %vm757_vm5, %v1449_v58  ;;  %v2859_v26 = vpop.f32.mrb[21].mxu0 }
 0x81f   : > { %2861 = vmatpush3.msk.msra.mxu1 %vm761_vm3, %v3919_v15  ;;  %2862 = vmatprep.mubr.msk.f32.mxu1 %vm3238_vm11, %v3239_v36 }
 0x820   : > { %3102 = vmatprep.subr.msk.bf16.mxu1 %vm3812_vm6, %v3237_v29 }
 0x822   : > { %2863 = vmatmul.mubr.msk.f32.vlgmr.msra.gmra.mrb[24].mxu1 %vm757_vm5, %v1597_v32 }
 0x823   : > { %3104 = vmatpush3.bf16.msk.msra.mxu1 %vm3812_vm6, %v3237_v29 }
 0x824   : > { %3106 = vmatprep.subr.msk.bf16.mxu1 %vm3828_vm13, %v3237_v29 }
 0x827   : > { %3108 = vmatpush3.bf16.msk.msra.mxu1 %vm3828_vm13, %v3237_v29 }
 0x828   : > { %3110 = vmatprep.subr.msk.bf16.mxu1 %vm3844_vm4, %v3237_v29 }
 0x82b   : > { %3112 = vmatpush3.bf16.msk.msra.mxu1 %vm3844_vm4, %v3237_v29 }
 0x82c   : > { %3114 = vmatprep.subr.msk.bf16.mxu1 %vm3857_vm14, %v3237_v29 }
 0x82f   : > { %3116 = vmatpush3.bf16.msk.msra.mxu1 %vm3857_vm14, %v3237_v29 }
 0x830   : > { %2909 = vmatprep.subr.msk.mxu1 %vm761_vm3, %v3919_v15 }
 0x8f1   : > { %v1522_v40 = vpop.f32.mrb[22].mxu1 }
 0x8f2   : > { %v2840_v41 = vpop.f32.mrb[23].mxu1  ;;  %v1674_v44 = vmul.f32 %v1522_v40, %v1522_v40 }
 0x8f5   : > { %v1670_v42 = vpop.f32.mrb[24].mxu1 }
 0x8f6   : > { %v1675_v45 = vmul.f32 %v1670_v42, %v1670_v42  ;;  %v2864_v1 = vpop.f32.mrb[25].mxu1  ;;  %vm1694_vm0 = vcmp.lt.f32.partialorder %v1670_v42, 0.0 }
 0x8f7   : > { %v1695_v63 = vsel %vm1694_vm0, -1.0, %v3240_v55 }
 0x8f8   : > { %v1676_v47 = vadd.f32 %v1675_v45, %v1674_v44 }
 0x8fa   : > { %3192 = vrsqrt.f32 %v1676_v47  ;;  %vm1679_vm9 = vcmp.eq.f32.partialorder %v1676_v47, inf  ;;  %v1682_v53 = vand.u32 2147483648, %v1676_v47  ;;  %vm1681_vm10 = vcmp.eq.f32.partialorder %v1676_v47, 0.0 }
 0x904   : > { %v3193_v48 = vpop.eup %3192 }
 0x905   : > { %v1678_v49 = vmul.f32 %v3193_v48, %v1676_v47 }
 0x907   : > { %v1680_v54 = vsel %vm1679_vm9, %v1676_v47, %v1678_v49 }
 0x908   : > { %v1683_v43 = vsel %vm1681_vm10, %v1682_v53, %v1680_v54 }
 0x909   : > { %v1684_v50 = vadd.f32 %v1683_v43, %v1522_v40  ;;  %v1696_v60 = vsub.f32 %v1683_v43, %v1522_v40 }
 0x90b   : > { %v1685_v52 = vmax.f32 %v1684_v50, 0.0  ;;  %v1697_v5 = vmax.f32 %v1696_v60, 0.0 }
 0x90d   : > { %v1686_v6 = vmul.f32 0.5, %v1685_v52  ;;  %v1698_v59 = vmul.f32 0.5, %v1697_v5 }
 0x90f   : > { %3194 = vrsqrt.f32 %v1686_v6  ;;  %vm1689_vm12 = vcmp.eq.f32.partialorder %v1686_v6, inf  ;;  %v1692_v19 = vand.u32 2147483648, %v1686_v6  ;;  %vm1691_vm1 = vcmp.eq.f32.partialorder %v1686_v6, 0.0 }
 0x910   : > { %3196 = vrsqrt.f32 %v1698_v59  ;;  %vm1701_vm2 = vcmp.eq.f32.partialorder %v1698_v59, inf  ;;  %v1704_v38 = vand.u32 2147483648, %v1698_v59  ;;  %vm1703_vm7 = vcmp.eq.f32.partialorder %v1698_v59, 0.0 }
 0x919   : > { %v3195_v14 = vpop.eup %3194 }
 0x91a   : > { %v3197_v12 = vpop.eup %3196  ;;  %v1688_v18 = vmul.f32 %v3195_v14, %v1686_v6 }
 0x91b   : > { %v1700_v20 = vmul.f32 %v3197_v12, %v1698_v59 }
 0x91c   : > { %v1690_v21 = vsel %vm1689_vm12, %v1686_v6, %v1688_v18 }
 0x91d   : > { %v1693_v39 = vsel %vm1691_vm1, %v1692_v19, %v1690_v21  ;;  %v1702_v51 = vsel %vm1701_vm2, %v1698_v59, %v1700_v20 }
 0x91e   : > { %v1705_v3 = vsel %vm1703_vm7, %v1704_v38, %v1702_v51  ;;  %v4132_v7 = vadd.f32 1e-08, %v1693_v39  ;;  %v1707_v0 = vmul.f32 2.0, %v1693_v39 }
 0x91f   : > { %v4134_v16 = vmul.f32 %v1705_v3, %v1695_v63 }
 0x920   : > { %v1764_v8 = vmul.f32 %v4132_v7, %v4132_v7  ;;  %v1708_v27 = vmin.f32 %v1707_v0, 30.0 }
 0x921   : > { %v1718_v2 = vmul.f32 2.0, %v4134_v16  ;;  %v1765_v11 = vmul.f32 %v4134_v16, %v4134_v16 }
 0x922   : > { %v1711_v55 = vsub.f32 0.0, %v1708_v27  ;;  %v1709_v40 = vmul.f32 1.442695, %v1708_v27 }
 0x923   : > { %v1719_v9 = vmul.f32 0.63661975, %v1718_v2  ;;  %v1766_v24 = vadd.f32 %v1765_v11, %v1764_v8 }
 0x924   : > { %v1712_v17 = vmul.f32 1.442695, %v1711_v55 }
 0x925   : > { %v1720_v31 = vadd.f32 0.5, %v1719_v9 }
 0x926   : > { %3198 = vpow2.f32 %v1712_v17 }
 0x927   : > { %v1721_v62 = vfloor.f32 %v1720_v31  ;;  %3200 = vpow2.f32 %v1709_v40 }
 0x929   : > { %v1722_v58 = vmul.f32 1.5707964, %v1721_v62  ;;  %v3147_v48 = vtrunc.f32 %v1721_v62 }
 0x92b   : > { %v1723_v32 = vsub.f32 %v1718_v2, %v1722_v58  ;;  %v3148_v50 = vcvt.f32.s32 %v3147_v48 }
 0x92d   : > { %v1724_v26 = vmul.f32 %v1723_v32, %v1723_v32  ;;  %v1741_v14 = vand.u32 3, %v3148_v50 }
 0x92f   : > { %v1725_v41 = vmul.f32 -0.0001984127, %v1724_v26  ;;  %v1732_v42 = vmul.f32 2.4801588e-05, %v1724_v26  ;;  %vm1744_vm8 = vcmp.eq.s32.totalorder %v1741_v14, 2  ;;  %vm1743_vm9 = vcmp.eq.s32.totalorder %v1741_v14, 1 }
 0x930   : > { %v3199_v5 = vpop.eup %3198  ;;  %vm1742_vm10 = vcmp.eq.s32.totalorder %v1741_v14, 0 }
 0x931   : > { %v1726_v44 = vadd.f32 0.008333334, %v1725_v41  ;;  %v1733_v45 = vadd.f32 -0.0013888889, %v1732_v42  ;;  %v3201_v12 = vpop.eup %3200 }
 0x932   : > { %v1716_v19 = vadd.f32 %v3201_v12, %v3199_v5  ;;  %v1714_v0 = vsub.f32 %v3201_v12, %v3199_v5 }
 0x933   : > { %v1727_v1 = vmul.f32 %v1726_v44, %v1724_v26  ;;  %v1734_v47 = vmul.f32 %v1733_v45, %v1724_v26 }
 0x934   : > { %v1717_v39 = vmul.f32 0.5, %v1716_v19  ;;  %v1715_v11 = vmul.f32 0.5, %v1714_v0 }
 0x935   : > { %v1728_v49 = vadd.f32 -0.16666667, %v1727_v1  ;;  %v1735_v53 = vadd.f32 0.041666668, %v1734_v47 }
 0x937   : > { %v1729_v54 = vmul.f32 %v1728_v49, %v1724_v26  ;;  %v1736_v43 = vmul.f32 %v1735_v53, %v1724_v26 }
 0x939   : > { %v1730_v60 = vadd.f32 1.0, %v1729_v54  ;;  %v1737_v52 = vadd.f32 -0.5, %v1736_v43 }
 0x93b   : > { %v1738_v6 = vmul.f32 %v1737_v52, %v1724_v26  ;;  %v1731_v59 = vmul.f32 %v1730_v60, %v1723_v32 }
 0x93d   : > { %v1739_v18 = vadd.f32 1.0, %v1738_v6  ;;  %v1745_v21 = vsub.f32 0.0, %v1731_v59 }
 0x93f   : > { %v1746_v20 = vsub.f32 0.0, %v1739_v18 }
 0x941   : > { %v1750_v38 = vsel %vm1744_vm8, %v1746_v20, %v1731_v59  ;;  %v1747_v8 = vsel %vm1744_vm8, %v1745_v21, %v1746_v20 }
 0x942   : > { %v1751_v51 = vsel %vm1743_vm9, %v1745_v21, %v1750_v38  ;;  %v1748_v2 = vsel %vm1743_vm9, %v1739_v18, %v1747_v8 }
 0x943   : > { %v1752_v63 = vsel %vm1742_vm10, %v1739_v18, %v1751_v51  ;;  %v1749_v27 = vsel %vm1742_vm10, %v1731_v59, %v1748_v2 }
 0x944   : > { %v1753_v3 = vadd.f32 %v1752_v63, %v1717_v39 }
 0x946   : > { %3202 = vrcp.f32 %v1753_v3 }
 0x947   : > { %3204 = vrcp.f32 %v1766_v24 }
 0x950   : > { %v3203_v9 = vpop.eup %3202 }
 0x951   : > { %v1755_v31 = vmul.f32 %v3203_v9, %v1715_v11  ;;  %v1756_v62 = vmul.f32 %v3203_v9, %v1749_v27  ;;  %v3205_v47 = vpop.eup %3204 }
 0x953   : > { %v1758_v55 = vmul.f32 %v1755_v31, %v4060_v22  ;;  %v1759_v58 = vmul.f32 %v1756_v62, %v4062_v10  ;;  %v1761_v32 = vmul.f32 %v1755_v31, %v4062_v10  ;;  %v1762_v17 = vmul.f32 %v1756_v62, %v4060_v22 }
 0x955   : > { %v1760_v26 = vsub.f32 %v1758_v55, %v1759_v58  ;;  %v1763_v40 = vadd.f32 %v1762_v17, %v1761_v32 }
 0x957   : > { %v1768_v41 = vmul.f32 %v1760_v26, %v4132_v7  ;;  %v1769_v42 = vmul.f32 %v1763_v40, %v4134_v16  ;;  %v1772_v44 = vmul.f32 %v1763_v40, %v4132_v7  ;;  %v1773_v24 = vmul.f32 %v1760_v26, %v4134_v16 }
 0x959   : > { %v1770_v45 = vadd.f32 %v1769_v42, %v1768_v41  ;;  %v1774_v1 = vsub.f32 %v1772_v44, %v1773_v24 }
 0x95b   : > { %v1771_v48 = vmul.f32 %v3205_v47, %v1770_v45  ;;  %v1775_v49 = vmul.f32 %v3205_v47, %v1774_v1 }
 0x95d   : > { %v1779_v53 = vrot.slane %v1771_v48, %v3978_v4  ;;  %v1787_v10 = vrot.slane %v1775_v49, %v3978_v4 }
 0x95f   : > { %v1780_v22 = vmul.f32 %v1779_v53, %v3875_v46  ;;  %v1788_v54 = vmul.f32 %v1787_v10, %v3891_v25  ;;  %v1893_v43 = vmul.f32 %v1787_v10, %v3875_v46  ;;  %v1897_v50 = vmul.f32 %v1779_v53, %v3891_v25 }
 0x960   : > { %v1781_v7 = vmul.f32 %v1779_v53, %v3877_v57  ;;  %v1789_v16 = vmul.f32 %v1787_v10, %v3893_v13  ;;  %v1894_v60 = vmul.f32 %v1787_v10, %v3877_v57  ;;  %v1898_v52 = vmul.f32 %v1779_v53, %v3893_v13 }
 0x961   : > { %v1792_v5 = vsub.f32 %v1780_v22, %v1788_v54  ;;  %v1901_v6 = vadd.f32 %v1897_v50, %v1893_v43  ;;  %v1782_v4 = vmul.f32 %v1779_v53, %v3879_v56  ;;  %v1790_v59 = vmul.f32 %v1787_v10, %v3897_v30 }
 0x962   : > { %v1793_v14 = vsub.f32 %v1781_v7, %v1789_v16  ;;  %v1902_v12 = vadd.f32 %v1898_v52, %v1894_v60  ;;  %v1895_v18 = vmul.f32 %v1787_v10, %v3879_v56  ;;  %v1899_v25 = vmul.f32 %v1779_v53, %v3897_v30 }
 0x963   : > { %2881 = vmatprep.mubr.msk.f32.mxu1 %vm652_vm15, %v1792_v5  ;;  %2903 = vmatprep.mubr.msk.f32.mxu0 %vm652_vm15, %v1901_v6  ;;  %v1794_v19 = vsub.f32 %v1782_v4, %v1790_v59  ;;  %v1783_v20 = vmul.f32 %v1779_v53, %v3881_v61  ;;  %v1791_v13 = vmul.f32 %v1787_v10, %v3903_v34 }
 0x964   : > { %2882 = vmatmul.mubr.msk.f32.vlgmr.msra.gmra.mrb[26].mxu1 %vm652_vm15, %v1793_v14  ;;  %2904 = vmatmul.mubr.msk.f32.vlgmr.msra.gmra.mrb[22].mxu0 %vm652_vm15, %v1902_v12  ;;  %v1903_v21 = vadd.f32 %v1899_v25, %v1895_v18  ;;  %v1896_v38 = vmul.f32 %v1787_v10, %v3881_v61  ;;  %v1900_v39 = vmul.f32 %v1779_v53, %v3903_v34 }
 0x965   : > { %2884 = vmatprep.mubr.msk.f32.mxu1 %vm652_vm15, %v1794_v19  ;;  %v1795_v30 = vsub.f32 %v1783_v20, %v1791_v13  ;;  %2910 = vmatpush3.msk.msra.mxu1 %vm761_vm3, %v3919_v15 }
 0x966   : > { %2906 = vmatprep.mubr.msk.f32.mxu0 %vm652_vm15, %v1903_v21  ;;  %v1904_v51 = vadd.f32 %v1900_v39, %v1896_v38  ;;  %3135 = vmatpush3.bf16.msk.msra.mxu0 %vm3812_vm6, %v3237_v29 }
 0x967   : > { %3136 = vmatprep.subr.bf16.mxu0 %v3236_v23  ;;  %2936 = vmatprep.subr.mxu1 %v3239_v36 }
 0x968   : > { %2885 = vmatmul.mubr.msk.f32.gmra.mrb[28].mxu1 %vm652_vm15, %v1795_v30  ;;  %2907 = vmatmul.mubr.msk.f32.gmra.mrb[24].mxu0 %vm652_vm15, %v1904_v51 }
 0x969   : > { %2933 = vmatprep.mubr.msk.f32.mxu0 %vm3238_vm11, %v3239_v36 }
 0x96a   : > { %3138 = vmatpush3.bf16.msk.msra.mxu0 %vm3828_vm13, %v3237_v29 }
 0x96b   : > { %3139 = vmatprep.subr.bf16.mxu0 %v3236_v23 }
 0x96e   : > { %3141 = vmatpush3.bf16.msk.msra.mxu0 %vm3844_vm4, %v3237_v29  ;;  %vm2331_vm4 = vcmask 516096  }
 0x96f   : > { %3142 = vmatprep.subr.bf16.mxu0 %v3236_v23 }
 0x972   : > { %3144 = vmatpush3.bf16.msk.msra.mxu0 %vm3857_vm14, %v3237_v29 }
 0xa37   : > { %v2883_v28 = vpop.f32.mrb[26].mxu1  ;;  %v2905_v34 = vpop.f32.mrb[22].mxu0 }
 0xa38   : > { %v2003_v63 = vmul.f32 %v2883_v28, %v2883_v28  ;;  %v2007_v3 = vmul.f32 %v2905_v34, %v2905_v34  ;;  %v1874_v8 = vpop.f32.mrb[27].mxu1  ;;  %v1983_v0 = vpop.f32.mrb[23].mxu0 }
 0xa39   : > { %v2002_v33 = vmul.f32 %v1874_v8, %v1874_v8  ;;  %v2006_v2 = vmul.f32 %v1983_v0, %v1983_v0 }
 0xa3a   : > { %v2011_v11 = vadd.f32 %v2007_v3, %v2003_v63 }
 0xa3b   : > { %v2886_v9 = vpop.f32.mrb[28].mxu1  ;;  %v2908_v27 = vpop.f32.mrb[24].mxu0  ;;  %v2010_v31 = vadd.f32 %v2006_v2, %v2002_v33 }
 0xa3c   : > { %v2005_v35 = vmul.f32 %v2886_v9, %v2886_v9  ;;  %v2009_v62 = vmul.f32 %v2908_v27, %v2908_v27  ;;  %v1884_v55 = vpop.f32.mrb[29].mxu1  ;;  %v1993_v23 = vpop.f32.mrb[25].mxu0  ;;  %v2017_v58 = vsel %vm757_vm5, %v2011_v11, -inf }
 0xa3d   : > { %v2004_v37 = vmul.f32 %v1884_v55, %v1884_v55  ;;  %v2008_v29 = vmul.f32 %v1993_v23, %v1993_v23  ;;  %2018 = vmax.xlane.f32.xlu1 %v2017_v58  ;;  %v2014_v32 = vsel %vm757_vm5, %v2010_v31, -inf }
 0xa3e   : > { %2015 = vmax.xlane.f32.xlu0 %v2014_v32  ;;  %v2013_v17 = vadd.f32 %v2009_v62, %v2005_v35 }
 0xa3f   : > { %v2012_v26 = vadd.f32 %v2008_v29, %v2004_v37 }
 0xa40   : > { %v2023_v40 = vsel %vm757_vm5, %v2013_v17, -inf }
 0xa41   : > { %2024 = vmax.xlane.f32.xlu1 %v2023_v40  ;;  %v2020_v41 = vsel %vm757_vm5, %v2012_v26, -inf }
 0xa42   : > { %2021 = vmax.xlane.f32.xlu0 %v2020_v41 }
 0xaca   : > { %v2019_v42 = vpop.xlane.xlu1 %2018 }
 0xacb   : > { %v2027_v44 = vsub.f32 %v2011_v11, %v2019_v42  ;;  %v2016_v24 = vpop.xlane.xlu0 %2015 }
 0xacc   : > { %v2026_v45 = vsub.f32 %v2010_v31, %v2016_v24 }
 0xacd   : > { %v2032_v1 = vmul.f32 1.442695, %v2027_v44 }
 0xace   : > { %v2030_v47 = vmul.f32 1.442695, %v2026_v45  ;;  %v2025_v48 = vpop.xlane.xlu1 %2024 }
 0xacf   : > { %3206 = vpow2.f32 %v2032_v1  ;;  %v2029_v49 = vsub.f32 %v2013_v17, %v2025_v48  ;;  %v2022_v53 = vpop.xlane.xlu0 %2021 }
 0xad0   : > { %3208 = vpow2.f32 %v2030_v47  ;;  %v2028_v10 = vsub.f32 %v2012_v26, %v2022_v53 }
 0xad1   : > { %v2036_v22 = vmul.f32 1.442695, %v2029_v49 }
 0xad2   : > { %v2034_v54 = vmul.f32 1.442695, %v2028_v10 }
 0xad3   : > { %3210 = vpow2.f32 %v2036_v22 }
 0xad4   : > { %3212 = vpow2.f32 %v2034_v54 }
 0xad9   : > { %v3207_v43 = vpop.eup %3206 }
 0xada   : > { %v3209_v50 = vpop.eup %3208  ;;  %v2041_v7 = vsel %vm757_vm5, %v3207_v43, 0.0 }
 0xadb   : > { %2042 = vadd.xlane.f32.xlu1 %v2041_v7  ;;  %v2038_v16 = vsel %vm757_vm5, %v3209_v50, 0.0 }
 0xadc   : > { %2039 = vadd.xlane.f32.xlu0 %v2038_v16 }
 0xadd   : > { %v3211_v60 = vpop.eup %3210 }
 0xade   : > { %v3213_v52 = vpop.eup %3212  ;;  %v2047_v5 = vsel %vm757_vm5, %v3211_v60, 0.0 }
 0xadf   : > { %2048 = vadd.xlane.f32.xlu1 %v2047_v5  ;;  %v2044_v6 = vsel %vm757_vm5, %v3213_v52, 0.0 }
 0xae0   : > { %2045 = vadd.xlane.f32.xlu0 %v2044_v6 }
 0xb68   : > { %v2043_v4 = vpop.xlane.xlu1 %2042 }
 0xb69   : > { %3214 = vrcp.f32 %v2043_v4  ;;  %v2040_v59 = vpop.xlane.xlu0 %2039 }
 0xb6a   : > { %3216 = vrcp.f32 %v2040_v59 }
 0xb6c   : > { %v2049_v14 = vpop.xlane.xlu1 %2048 }
 0xb6d   : > { %3218 = vrcp.f32 %v2049_v14  ;;  %v2046_v12 = vpop.xlane.xlu0 %2045 }
 0xb6e   : > { %3220 = vrcp.f32 %v2046_v12 }
 0xb73   : > { %v3215_v18 = vpop.eup %3214 }
 0xb74   : > { %v3217_v25 = vpop.eup %3216  ;;  %v2055_v20 = vmul.f32 %v3215_v18, %v3207_v43 }
 0xb75   : > { %v2054_v19 = vmul.f32 %v3217_v25, %v3209_v50 }
 0xb77   : > { %v3219_v13 = vpop.eup %3218  ;;  %2911 = vmatprep.mubr.msk.f32.mxu1 %vm757_vm5, %v2054_v19 }
 0xb78   : > { %v3221_v21 = vpop.eup %3220  ;;  %2912 = vmatmul.mubr.msk.f32.vlgmr.msra.gmra.mrb[30].mxu1 %vm757_vm5, %v2055_v20  ;;  %v2057_v39 = vmul.f32 %v3219_v13, %v3211_v60 }
 0xb79   : > { %v2056_v38 = vmul.f32 %v3221_v21, %v3213_v52  ;;  %2937 = vmatpush3.msk.msra.mxu1 %vm761_vm3, %v3919_v15 }
 0xb7b   : > { %2914 = vmatprep.mubr.msk.f32.mxu1 %vm757_vm5, %v2056_v38 }
 0xb7c   : > { %2915 = vmatmul.mubr.msk.f32.gmra.mrb[32].mxu1 %vm757_vm5, %v2057_v39 }
 0xb7d   : > { %2938 = vmatprep.mubr.msk.f32.mxu1 %vm3238_vm11, %v3239_v36 }
 0xc4b   : > { %v2913_v30 = vpop.f32.mrb[30].mxu1 }
 0xc4c   : > { %v2156_v51 = vmul.f32 %v2913_v30, %v3877_v57  ;;  %v2136_v28 = vpop.f32.mrb[31].mxu1 }
 0xc4d   : > { %v2155_v34 = vmul.f32 %v2136_v28, %v3875_v46 }
 0xc4e   : > { %v2160_v63 = vsel %vm652_vm15, %v2156_v51, 0.0 }
 0xc4f   : > { %v2159_v3 = vsel %vm652_vm15, %v2155_v34, 0.0  ;;  %v2916_v8 = vpop.f32.mrb[32].mxu1 }
 0xc50   : > { %v2161_v15 = vadd.f32 %v2160_v63, %v2159_v3  ;;  %v2146_v0 = vpop.f32.mrb[33].mxu1  ;;  %v2158_v33 = vmul.f32 %v2916_v8, %v3881_v61 }
 0xc51   : > { %v2157_v2 = vmul.f32 %v2146_v0, %v3879_v56 }
 0xc52   : > { %v2164_v9 = vsel %vm652_vm15, %v2158_v33, 0.0 }
 0xc53   : > { %v2162_v11 = vsel %vm652_vm15, %v2157_v2, 0.0 }
 0xc54   : > { %v2163_v36 = vadd.f32 %v2162_v11, %v2161_v15 }
 0xc56   : > { %v2165_v57 = vadd.f32 %v2164_v9, %v2163_v36 }
 0xc58   : > { %v2166_v27 = vrot.slane %v2165_v57, 4 }
 0xc5a   : > { %v2167_v31 = vadd.f32 %v2166_v27, %v2165_v57 }
 0xc5c   : > { %v2168_v46 = vrot.slane %v2167_v31, 2 }
 0xc5e   : > { %v2169_v35 = vadd.f32 %v2168_v46, %v2167_v31 }
 0xc60   : > { %v2170_v62 = vrot.slane %v2169_v35, 1 }
 0xc62   : > { %v2171_v55 = vadd.f32 %v2170_v62, %v2169_v35 }
 0xc64   : > { %v2172_v23 = vmul.f32 %v2171_v55, %v2171_v55 }
 0xc66   : > { %2934 = vmatmul.mubr.msk.f32.vlgmr.msra.gmra.mrb[26].mxu0 %vm652_vm15, %v2172_v23 }
 0xd39   : > { %v2242_v58 = vpop.f32.mrb[26].mxu0 }
 0xd3a   : > { %v2935_v37 = vpop.f32.mrb[27].mxu0  ;;  %2939 = vmatmul.mubr.msk.f32.vlgmr.msra.gmra.mrb[34].mxu1 %vm757_vm5, %v2242_v58 }
 0xe0d   : > { %v2315_v56 = vpop.f32.mrb[34].mxu1 }
 0xe0e   : > { %3222 = vrsqrt.f32 %v2315_v56  ;;  %v2940_v61 = vpop.f32.mrb[35].mxu1  ;;  %vm2321_vm6 = vcmp.eq.f32.partialorder %v2315_v56, inf  ;;  %v2324_v17 = vand.u32 2147483648, %v2315_v56  ;;  %vm2323_vm13 = vcmp.eq.f32.partialorder %v2315_v56, 0.0 }
 0xe18   : > { %v3223_v29 = vpop.eup %3222 }
 0xe19   : > { %v2320_v32 = vmul.f32 %v3223_v29, %v2315_v56 }
 0xe1b   : > { %v2322_v26 = vsel %vm2321_vm6, %v2315_v56, %v2320_v32 }
 0xe1c   : > { %v2325_v40 = vsel %vm2323_vm13, %v2324_v17, %v2322_v26 }
 0xe1d   : > { %3224 = vtanh.f32 %v2325_v40  ;;  %v2328_v41 = vadd.f32 1e-08, %v2325_v40 }
 0xe1f   : > { %3226 = vrcp.f32 %v2328_v41 }
 0xe27   : > { %v3225_v42 = vpop.eup %3224 }
 0xe28   : > { %v2327_v44 = vmul.f32 %v3225_v42, %v2171_v55 }
 0xe29   : > { %v3227_v24 = vpop.eup %3226 }
 0xe2a   : > { %v2330_v45 = vmul.f32 %v3227_v24, %v2327_v44 }
 0xe2c   : > { %2332 = vst.msk [vmem:[%s213_s8] sm:$0x1] %vm2331_vm4, %v2330_v45 }
 0xe2d PF: > { %s14_s15 = sadd.s32 1, %s3234_s15  }
 0xe2e   : > { %p11_p4 = scmp.ge.s32.totalorder %s14_s15, 4  }
 0xe30   :  { %13 = sbr.rel (!%p11_p4) target bundleno = 1 (0x1), region = 69 }

</bundles_post_ra>
